<compile_context>
chip_gen: v7x
topology: tpu7x:2x2x1
jax: 0.10.0
libtpu: 0.0.40
codegen_flags: <defaults>
</compile_context>

<pallas_src>
import numpy as np

import jax
import jax.numpy as jnp
from jax.experimental import pallas as pl
from jax.experimental.pallas import tpu as pltpu

INPUT_SIZE = 4
INPUT_PAD = 8            # pad contraction dim to a sublane multiple (zeros, exact)
HIDDEN_SIZE = 64
NUM_HIDDEN_LAYERS = 8
OUTPUT_SIZE = 10
OUT_FLAT = 16            # 4x4 symmetric metric, flattened row-major

CHUNK = 256              # batch columns processed per inner (in-kernel) step
MAX_TILE_B = 1024        # batch columns per grid step (DMA tile)

# Selection matrix folding the symmetric-metric gather into the output layer:
# out16[:, j] = out10[:, _IDX_FLAT[j]]  <=>  out16 = out10 @ _SELECT
_IDX_FLAT = (0, 1, 2, 3,
             1, 4, 5, 6,
             2, 5, 7, 8,
             3, 6, 8, 9)
_SELECT_NP = np.zeros((OUTPUT_SIZE, OUT_FLAT), np.float32)
for _j, _k in enumerate(_IDX_FLAT):
    _SELECT_NP[_k, _j] = 1.0


def _round_up(x, m):
    return ((x + m - 1) // m) * m


def _choose_tile_b(B):
    """Batch columns per grid step (lane dim of the transposed layout)."""
    small = _round_up(max(B, 1), 128)
    if small <= CHUNK:
        return small  # small batch: one tile, one chunk
    # Aim for >= 2 grid steps (megacore), cap tile size to bound VMEM / vreg
    # pressure; tile is always a multiple of CHUNK on this path.
    half = _round_up(_round_up(B, 2 * CHUNK) // 2, CHUNK)
    return min(MAX_TILE_B, half)


def _logsigmoid(z):
    # numerically stable log(sigmoid(z)) = min(z, 0) - log1p(exp(-|z|))
    return jnp.minimum(z, 0.0) - jnp.log1p(jnp.exp(-jnp.abs(z)))


def _make_kernel(n_chunks, chunk):
    """MLP kernel in transposed (features, batch) layout.

    Refs:
      xt_ref    : (INPUT_PAD, TILE_B)           input tile, batch on lanes
      w_in_t    : (HIDDEN, INPUT_PAD)
      b_in      : (HIDDEN, 1)
      wh_t      : (L, HIDDEN, HIDDEN)
      bh        : (L, HIDDEN, 1)
      w_out_t   : (OUT_FLAT, HIDDEN)            symmetric gather folded in
      b_out     : (OUT_FLAT, 1)
      o_ref     : (OUT_FLAT, TILE_B)            lane-dense output slab
    """

    def kernel(xt_ref, w_in_t_ref, b_in_ref, wh_t_ref, bh_ref,
               w_out_t_ref, b_out_ref, o_ref):
        for c in range(n_chunks):          # static, small (<= 4) unroll
            col = c * chunk
            xc = xt_ref[:, col:col + chunk]                    # (INPUT_PAD, chunk)
            h = jnp.dot(w_in_t_ref[...], xc,
                        preferred_element_type=jnp.float32)    # (HIDDEN, chunk)
            h = _logsigmoid(h + b_in_ref[...])
            for i in range(NUM_HIDDEN_LAYERS):                 # static unroll
                h = jnp.dot(wh_t_ref[i], h,
                            preferred_element_type=jnp.float32)
                h = _logsigmoid(h + bh_ref[i])
            out = jnp.dot(w_out_t_ref[...], h,
                          preferred_element_type=jnp.float32)  # (OUT_FLAT, chunk)
            o_ref[:, col:col + chunk] = (out + b_out_ref[...]).astype(o_ref.dtype)

    return kernel


@jax.jit
def metric_pinn_forward(x, w_in, b_in, wh, bh, w_out, b_out):
    """x: (B, 4) -> g: (B, 4, 4) symmetric metric."""
    B = x.shape[0]
    tile = _choose_tile_b(B)
    chunk = min(CHUNK, tile)
    n_chunks = tile // chunk
    Bp = _round_up(B, tile)

    # --- tiny layout plumbing (fused by XLA, once per call) ---
    # transpose to (features, batch); pad batch to Bp and features 4 -> 8
    x_t = jnp.pad(x, ((0, Bp - B), (0, INPUT_PAD - INPUT_SIZE))).T     # (8, Bp)
    w_in_t = jnp.pad(w_in, ((0, INPUT_PAD - INPUT_SIZE), (0, 0))).T    # (64, 8)
    b_in_c = b_in.reshape(HIDDEN_SIZE, 1)
    wh_t = jnp.transpose(wh, (0, 2, 1))                                # (8, 64, 64)
    bh_c = bh.reshape(NUM_HIDDEN_LAYERS, HIDDEN_SIZE, 1)
    sel = jnp.asarray(_SELECT_NP)                                      # (10, 16)
    w_out_t = (w_out @ sel).T                                          # (16, 64)
    b_out_c = (b_out @ sel).reshape(OUT_FLAT, 1)

    out_t = pl.pallas_call(
        _make_kernel(n_chunks, chunk),
        out_shape=jax.ShapeDtypeStruct((OUT_FLAT, Bp), jnp.float32),
        grid_spec=pltpu.PrefetchScalarGridSpec(
            num_scalar_prefetch=0,
            grid=(Bp // tile,),
            in_specs=[
                pl.BlockSpec((INPUT_PAD, tile), lambda i: (0, i)),
                pl.BlockSpec((HIDDEN_SIZE, INPUT_PAD), lambda i: (0, 0)),
                pl.BlockSpec((HIDDEN_SIZE, 1), lambda i: (0, 0)),
                pl.BlockSpec((NUM_HIDDEN_LAYERS, HIDDEN_SIZE, HIDDEN_SIZE),
                             lambda i: (0, 0, 0)),
                pl.BlockSpec((NUM_HIDDEN_LAYERS, HIDDEN_SIZE, 1),
                             lambda i: (0, 0, 0)),
                pl.BlockSpec((OUT_FLAT, HIDDEN_SIZE), lambda i: (0, 0)),
                pl.BlockSpec((OUT_FLAT, 1), lambda i: (0, 0)),
            ],
            out_specs=pl.BlockSpec((OUT_FLAT, tile), lambda i: (0, i)),
        ),
        compiler_params=pltpu.CompilerParams(
            dimension_semantics=("parallel",)),
    )(x_t, w_in_t, b_in_c, wh_t, bh_c, w_out_t, b_out_c)

    # (16, Bp) -> (B, 16) -> (B, 4, 4); symmetric gather already folded into w_out.
    g = out_t[:, :B].T.reshape(B, 4, 4)
    return g


def init_params(key):
    # Deterministic init matching nn.Linear shapes (synthetic weights).
    ks = jax.random.split(key, 6)
    scale = 0.1
    w_in = scale * jax.random.normal(ks[0], (INPUT_SIZE, HIDDEN_SIZE), jnp.float32)
    b_in = scale * jax.random.normal(ks[1], (HIDDEN_SIZE,), jnp.float32)
    wh = scale * jax.random.normal(
        ks[2], (NUM_HIDDEN_LAYERS, HIDDEN_SIZE, HIDDEN_SIZE), jnp.float32)
    bh = scale * jax.random.normal(
        ks[3], (NUM_HIDDEN_LAYERS, HIDDEN_SIZE), jnp.float32)
    w_out = scale * jax.random.normal(ks[4], (HIDDEN_SIZE, OUTPUT_SIZE), jnp.float32)
    b_out = scale * jax.random.normal(ks[5], (OUTPUT_SIZE,), jnp.float32)
    return w_in, b_in, wh, bh, w_out, b_out


def reference_forward(x, w_in, b_in, wh, bh, w_out, b_out):
    h = jax.nn.log_sigmoid(x @ w_in + b_in)
    for i in range(NUM_HIDDEN_LAYERS):
        h = jax.nn.log_sigmoid(h @ wh[i] + bh[i])
    out = h @ w_out + b_out
    idx = jnp.array([[0, 1, 2, 3],
                     [1, 4, 5, 6],
                     [2, 5, 7, 8],
                     [3, 6, 8, 9]], dtype=jnp.int32)
    return out[:, idx]


if __name__ == "__main__":
    key = jax.random.PRNGKey(0)
    k_x, k_x2, k_p = jax.random.split(key, 3)
    params = init_params(k_p)

    # Small shape consistent with the module: batch=8, input features=4.
    x_small = jax.random.normal(k_x, (8, INPUT_SIZE), jnp.float32)
    g = jax.block_until_ready(metric_pinn_forward(x_small, *params))
    g_ref = reference_forward(x_small, *params)
    assert g.shape == (8, 4, 4)
    assert jnp.allclose(g, g_ref, atol=3e-5, rtol=3e-5), \
        float(jnp.max(jnp.abs(g - g_ref)))

    # Exercise the multi-grid-step path (still tiny: 2 grid steps of 256 cols).
    x_big = jax.random.normal(k_x2, (260, INPUT_SIZE), jnp.float32)
    g2 = jax.block_until_ready(metric_pinn_forward(x_big, *params))
    g2_ref = reference_forward(x_big, *params)
    assert g2.shape == (260, 4, 4)
    assert jnp.allclose(g2, g2_ref, atol=3e-5, rtol=3e-5), \
        float(jnp.max(jnp.abs(g2 - g2_ref)))

    print("KERNEL_OK")
</pallas_src>

<mosaic_0001>
module attributes {stable_mosaic.version = 11 : i64} {
  func.func @kernel(%arg0: i32, %arg1: memref<8x128xf32, #tpu.memory_space<vmem>>, %arg2: memref<64x8xf32, #tpu.memory_space<vmem>>, %arg3: memref<64x1xf32, #tpu.memory_space<vmem>>, %arg4: memref<8x64x64xf32, #tpu.memory_space<vmem>>, %arg5: memref<8x64x1xf32, #tpu.memory_space<vmem>>, %arg6: memref<16x64xf32, #tpu.memory_space<vmem>>, %arg7: memref<16x1xf32, #tpu.memory_space<vmem>>, %arg8: memref<16x128xf32, #tpu.memory_space<vmem>>) attributes {dimension_semantics = [#tpu.dimension_semantics<parallel>], iteration_bounds = array<i64: 1>, scalar_prefetch = 0 : i64, scratch_operands = 0 : i64, tpu.core_type = #tpu.core_type<tc>, window_params = [{transform_indices = @transform_0, window_bounds = array<i64: 8, 128>}, {pipeline_mode = #tpu.pipeline_mode<synchronous>, transform_indices = @transform_1, window_bounds = array<i64: 64, 8>}, {pipeline_mode = #tpu.pipeline_mode<synchronous>, transform_indices = @transform_2, window_bounds = array<i64: 64, 1>}, {pipeline_mode = #tpu.pipeline_mode<synchronous>, transform_indices = @transform_3, window_bounds = array<i64: 8, 64, 64>}, {pipeline_mode = #tpu.pipeline_mode<synchronous>, transform_indices = @transform_4, window_bounds = array<i64: 8, 64, 1>}, {pipeline_mode = #tpu.pipeline_mode<synchronous>, transform_indices = @transform_5, window_bounds = array<i64: 16, 64>}, {pipeline_mode = #tpu.pipeline_mode<synchronous>, transform_indices = @transform_6, window_bounds = array<i64: 16, 1>}, {transform_indices = @transform_7, window_bounds = array<i64: 16, 128>}]} {
    %c0 = arith.constant 0 : index
    %c0_0 = arith.constant 0 : index
    %0 = vector.load %arg1[%c0, %c0_0] : memref<8x128xf32, #tpu.memory_space<vmem>>, vector<8x128xf32>
    %c0_1 = arith.constant 0 : index
    %c0_2 = arith.constant 0 : index
    %1 = vector.load %arg2[%c0_1, %c0_2] : memref<64x8xf32, #tpu.memory_space<vmem>>, vector<64x8xf32>
    %cst = arith.constant dense<0.000000e+00> : vector<64x128xf32>
    %2 = tpu.matmul %1, %0, %cst {dimension_numbers = #tpu.dot_dimension_numbers<[1], [0], [0], [1], [0, 0, 1, 1], [], []>} : vector<64x8xf32>, vector<8x128xf32>, vector<64x128xf32> -> vector<64x128xf32>
    %c0_3 = arith.constant 0 : index
    %c0_4 = arith.constant 0 : index
    %3 = vector.load %arg3[%c0_3, %c0_4] : memref<64x1xf32, #tpu.memory_space<vmem>>, vector<64x1xf32>
    %4 = vector.broadcast %3 : vector<64x1xf32> to vector<64x128xf32>
    %5 = arith.addf %2, %4 : vector<64x128xf32>
    %cst_5 = arith.constant 0.000000e+00 : f32
    %6 = vector.broadcast %cst_5 : f32 to vector<64x128xf32>
    %7 = arith.minimumf %5, %6 : vector<64x128xf32>
    %8 = math.absf %5 : vector<64x128xf32>
    %cst_6 = arith.constant 0.000000e+00 : f32
    %9 = vector.broadcast %cst_6 : f32 to vector<64x128xf32>
    %10 = arith.subf %9, %8 : vector<64x128xf32>
    %11 = math.exp %10 : vector<64x128xf32>
    %12 = math.log1p %11 : vector<64x128xf32>
    %13 = arith.subf %7, %12 : vector<64x128xf32>
    %c0_7 = arith.constant 0 : index
    %c0_8 = arith.constant 0 : index
    %c0_9 = arith.constant 0 : index
    %14 = vector.load %arg4[%c0_7, %c0_8, %c0_9] : memref<8x64x64xf32, #tpu.memory_space<vmem>>, vector<1x64x64xf32>
    %15 = vector.shape_cast %14 : vector<1x64x64xf32> to vector<64x64xf32>
    %cst_10 = arith.constant dense<0.000000e+00> : vector<64x128xf32>
    %16 = tpu.matmul %15, %13, %cst_10 {dimension_numbers = #tpu.dot_dimension_numbers<[1], [0], [0], [1], [0, 0, 1, 1], [], []>} : vector<64x64xf32>, vector<64x128xf32>, vector<64x128xf32> -> vector<64x128xf32>
    %c0_11 = arith.constant 0 : index
    %c0_12 = arith.constant 0 : index
    %c0_13 = arith.constant 0 : index
    %17 = vector.load %arg5[%c0_11, %c0_12, %c0_13] : memref<8x64x1xf32, #tpu.memory_space<vmem>>, vector<1x64x1xf32>
    %18 = vector.shape_cast %17 : vector<1x64x1xf32> to vector<64x1xf32>
    %19 = vector.broadcast %18 : vector<64x1xf32> to vector<64x128xf32>
    %20 = arith.addf %16, %19 : vector<64x128xf32>
    %cst_14 = arith.constant 0.000000e+00 : f32
    %21 = vector.broadcast %cst_14 : f32 to vector<64x128xf32>
    %22 = arith.minimumf %20, %21 : vector<64x128xf32>
    %23 = math.absf %20 : vector<64x128xf32>
    %cst_15 = arith.constant 0.000000e+00 : f32
    %24 = vector.broadcast %cst_15 : f32 to vector<64x128xf32>
    %25 = arith.subf %24, %23 : vector<64x128xf32>
    %26 = math.exp %25 : vector<64x128xf32>
    %27 = math.log1p %26 : vector<64x128xf32>
    %28 = arith.subf %22, %27 : vector<64x128xf32>
    %c1 = arith.constant 1 : index
    %c0_16 = arith.constant 0 : index
    %c0_17 = arith.constant 0 : index
    %29 = vector.load %arg4[%c1, %c0_16, %c0_17] : memref<8x64x64xf32, #tpu.memory_space<vmem>>, vector<1x64x64xf32>
    %30 = vector.shape_cast %29 : vector<1x64x64xf32> to vector<64x64xf32>
    %cst_18 = arith.constant dense<0.000000e+00> : vector<64x128xf32>
    %31 = tpu.matmul %30, %28, %cst_18 {dimension_numbers = #tpu.dot_dimension_numbers<[1], [0], [0], [1], [0, 0, 1, 1], [], []>} : vector<64x64xf32>, vector<64x128xf32>, vector<64x128xf32> -> vector<64x128xf32>
    %c1_19 = arith.constant 1 : index
    %c0_20 = arith.constant 0 : index
    %c0_21 = arith.constant 0 : index
    %32 = vector.load %arg5[%c1_19, %c0_20, %c0_21] : memref<8x64x1xf32, #tpu.memory_space<vmem>>, vector<1x64x1xf32>
    %33 = vector.shape_cast %32 : vector<1x64x1xf32> to vector<64x1xf32>
    %34 = vector.broadcast %33 : vector<64x1xf32> to vector<64x128xf32>
    %35 = arith.addf %31, %34 : vector<64x128xf32>
    %cst_22 = arith.constant 0.000000e+00 : f32
    %36 = vector.broadcast %cst_22 : f32 to vector<64x128xf32>
    %37 = arith.minimumf %35, %36 : vector<64x128xf32>
    %38 = math.absf %35 : vector<64x128xf32>
    %cst_23 = arith.constant 0.000000e+00 : f32
    %39 = vector.broadcast %cst_23 : f32 to vector<64x128xf32>
    %40 = arith.subf %39, %38 : vector<64x128xf32>
    %41 = math.exp %40 : vector<64x128xf32>
    %42 = math.log1p %41 : vector<64x128xf32>
    %43 = arith.subf %37, %42 : vector<64x128xf32>
    %c2 = arith.constant 2 : index
    %c0_24 = arith.constant 0 : index
    %c0_25 = arith.constant 0 : index
    %44 = vector.load %arg4[%c2, %c0_24, %c0_25] : memref<8x64x64xf32, #tpu.memory_space<vmem>>, vector<1x64x64xf32>
    %45 = vector.shape_cast %44 : vector<1x64x64xf32> to vector<64x64xf32>
    %cst_26 = arith.constant dense<0.000000e+00> : vector<64x128xf32>
    %46 = tpu.matmul %45, %43, %cst_26 {dimension_numbers = #tpu.dot_dimension_numbers<[1], [0], [0], [1], [0, 0, 1, 1], [], []>} : vector<64x64xf32>, vector<64x128xf32>, vector<64x128xf32> -> vector<64x128xf32>
    %c2_27 = arith.constant 2 : index
    %c0_28 = arith.constant 0 : index
    %c0_29 = arith.constant 0 : index
    %47 = vector.load %arg5[%c2_27, %c0_28, %c0_29] : memref<8x64x1xf32, #tpu.memory_space<vmem>>, vector<1x64x1xf32>
    %48 = vector.shape_cast %47 : vector<1x64x1xf32> to vector<64x1xf32>
    %49 = vector.broadcast %48 : vector<64x1xf32> to vector<64x128xf32>
    %50 = arith.addf %46, %49 : vector<64x128xf32>
    %cst_30 = arith.constant 0.000000e+00 : f32
    %51 = vector.broadcast %cst_30 : f32 to vector<64x128xf32>
    %52 = arith.minimumf %50, %51 : vector<64x128xf32>
    %53 = math.absf %50 : vector<64x128xf32>
    %cst_31 = arith.constant 0.000000e+00 : f32
    %54 = vector.broadcast %cst_31 : f32 to vector<64x128xf32>
    %55 = arith.subf %54, %53 : vector<64x128xf32>
    %56 = math.exp %55 : vector<64x128xf32>
    %57 = math.log1p %56 : vector<64x128xf32>
    %58 = arith.subf %52, %57 : vector<64x128xf32>
    %c3 = arith.constant 3 : index
    %c0_32 = arith.constant 0 : index
    %c0_33 = arith.constant 0 : index
    %59 = vector.load %arg4[%c3, %c0_32, %c0_33] : memref<8x64x64xf32, #tpu.memory_space<vmem>>, vector<1x64x64xf32>
    %60 = vector.shape_cast %59 : vector<1x64x64xf32> to vector<64x64xf32>
    %cst_34 = arith.constant dense<0.000000e+00> : vector<64x128xf32>
    %61 = tpu.matmul %60, %58, %cst_34 {dimension_numbers = #tpu.dot_dimension_numbers<[1], [0], [0], [1], [0, 0, 1, 1], [], []>} : vector<64x64xf32>, vector<64x128xf32>, vector<64x128xf32> -> vector<64x128xf32>
    %c3_35 = arith.constant 3 : index
    %c0_36 = arith.constant 0 : index
    %c0_37 = arith.constant 0 : index
    %62 = vector.load %arg5[%c3_35, %c0_36, %c0_37] : memref<8x64x1xf32, #tpu.memory_space<vmem>>, vector<1x64x1xf32>
    %63 = vector.shape_cast %62 : vector<1x64x1xf32> to vector<64x1xf32>
    %64 = vector.broadcast %63 : vector<64x1xf32> to vector<64x128xf32>
    %65 = arith.addf %61, %64 : vector<64x128xf32>
    %cst_38 = arith.constant 0.000000e+00 : f32
    %66 = vector.broadcast %cst_38 : f32 to vector<64x128xf32>
    %67 = arith.minimumf %65, %66 : vector<64x128xf32>
    %68 = math.absf %65 : vector<64x128xf32>
    %cst_39 = arith.constant 0.000000e+00 : f32
    %69 = vector.broadcast %cst_39 : f32 to vector<64x128xf32>
    %70 = arith.subf %69, %68 : vector<64x128xf32>
    %71 = math.exp %70 : vector<64x128xf32>
    %72 = math.log1p %71 : vector<64x128xf32>
    %73 = arith.subf %67, %72 : vector<64x128xf32>
    %c4 = arith.constant 4 : index
    %c0_40 = arith.constant 0 : index
    %c0_41 = arith.constant 0 : index
    %74 = vector.load %arg4[%c4, %c0_40, %c0_41] : memref<8x64x64xf32, #tpu.memory_space<vmem>>, vector<1x64x64xf32>
    %75 = vector.shape_cast %74 : vector<1x64x64xf32> to vector<64x64xf32>
    %cst_42 = arith.constant dense<0.000000e+00> : vector<64x128xf32>
    %76 = tpu.matmul %75, %73, %cst_42 {dimension_numbers = #tpu.dot_dimension_numbers<[1], [0], [0], [1], [0, 0, 1, 1], [], []>} : vector<64x64xf32>, vector<64x128xf32>, vector<64x128xf32> -> vector<64x128xf32>
    %c4_43 = arith.constant 4 : index
    %c0_44 = arith.constant 0 : index
    %c0_45 = arith.constant 0 : index
    %77 = vector.load %arg5[%c4_43, %c0_44, %c0_45] : memref<8x64x1xf32, #tpu.memory_space<vmem>>, vector<1x64x1xf32>
    %78 = vector.shape_cast %77 : vector<1x64x1xf32> to vector<64x1xf32>
    %79 = vector.broadcast %78 : vector<64x1xf32> to vector<64x128xf32>
    %80 = arith.addf %76, %79 : vector<64x128xf32>
    %cst_46 = arith.constant 0.000000e+00 : f32
    %81 = vector.broadcast %cst_46 : f32 to vector<64x128xf32>
    %82 = arith.minimumf %80, %81 : vector<64x128xf32>
    %83 = math.absf %80 : vector<64x128xf32>
    %cst_47 = arith.constant 0.000000e+00 : f32
    %84 = vector.broadcast %cst_47 : f32 to vector<64x128xf32>
    %85 = arith.subf %84, %83 : vector<64x128xf32>
    %86 = math.exp %85 : vector<64x128xf32>
    %87 = math.log1p %86 : vector<64x128xf32>
    %88 = arith.subf %82, %87 : vector<64x128xf32>
    %c5 = arith.constant 5 : index
    %c0_48 = arith.constant 0 : index
    %c0_49 = arith.constant 0 : index
    %89 = vector.load %arg4[%c5, %c0_48, %c0_49] : memref<8x64x64xf32, #tpu.memory_space<vmem>>, vector<1x64x64xf32>
    %90 = vector.shape_cast %89 : vector<1x64x64xf32> to vector<64x64xf32>
    %cst_50 = arith.constant dense<0.000000e+00> : vector<64x128xf32>
    %91 = tpu.matmul %90, %88, %cst_50 {dimension_numbers = #tpu.dot_dimension_numbers<[1], [0], [0], [1], [0, 0, 1, 1], [], []>} : vector<64x64xf32>, vector<64x128xf32>, vector<64x128xf32> -> vector<64x128xf32>
    %c5_51 = arith.constant 5 : index
    %c0_52 = arith.constant 0 : index
    %c0_53 = arith.constant 0 : index
    %92 = vector.load %arg5[%c5_51, %c0_52, %c0_53] : memref<8x64x1xf32, #tpu.memory_space<vmem>>, vector<1x64x1xf32>
    %93 = vector.shape_cast %92 : vector<1x64x1xf32> to vector<64x1xf32>
    %94 = vector.broadcast %93 : vector<64x1xf32> to vector<64x128xf32>
    %95 = arith.addf %91, %94 : vector<64x128xf32>
    %cst_54 = arith.constant 0.000000e+00 : f32
    %96 = vector.broadcast %cst_54 : f32 to vector<64x128xf32>
    %97 = arith.minimumf %95, %96 : vector<64x128xf32>
    %98 = math.absf %95 : vector<64x128xf32>
    %cst_55 = arith.constant 0.000000e+00 : f32
    %99 = vector.broadcast %cst_55 : f32 to vector<64x128xf32>
    %100 = arith.subf %99, %98 : vector<64x128xf32>
    %101 = math.exp %100 : vector<64x128xf32>
    %102 = math.log1p %101 : vector<64x128xf32>
    %103 = arith.subf %97, %102 : vector<64x128xf32>
    %c6 = arith.constant 6 : index
    %c0_56 = arith.constant 0 : index
    %c0_57 = arith.constant 0 : index
    %104 = vector.load %arg4[%c6, %c0_56, %c0_57] : memref<8x64x64xf32, #tpu.memory_space<vmem>>, vector<1x64x64xf32>
    %105 = vector.shape_cast %104 : vector<1x64x64xf32> to vector<64x64xf32>
    %cst_58 = arith.constant dense<0.000000e+00> : vector<64x128xf32>
    %106 = tpu.matmul %105, %103, %cst_58 {dimension_numbers = #tpu.dot_dimension_numbers<[1], [0], [0], [1], [0, 0, 1, 1], [], []>} : vector<64x64xf32>, vector<64x128xf32>, vector<64x128xf32> -> vector<64x128xf32>
    %c6_59 = arith.constant 6 : index
    %c0_60 = arith.constant 0 : index
    %c0_61 = arith.constant 0 : index
    %107 = vector.load %arg5[%c6_59, %c0_60, %c0_61] : memref<8x64x1xf32, #tpu.memory_space<vmem>>, vector<1x64x1xf32>
    %108 = vector.shape_cast %107 : vector<1x64x1xf32> to vector<64x1xf32>
    %109 = vector.broadcast %108 : vector<64x1xf32> to vector<64x128xf32>
    %110 = arith.addf %106, %109 : vector<64x128xf32>
    %cst_62 = arith.constant 0.000000e+00 : f32
    %111 = vector.broadcast %cst_62 : f32 to vector<64x128xf32>
    %112 = arith.minimumf %110, %111 : vector<64x128xf32>
    %113 = math.absf %110 : vector<64x128xf32>
    %cst_63 = arith.constant 0.000000e+00 : f32
    %114 = vector.broadcast %cst_63 : f32 to vector<64x128xf32>
    %115 = arith.subf %114, %113 : vector<64x128xf32>
    %116 = math.exp %115 : vector<64x128xf32>
    %117 = math.log1p %116 : vector<64x128xf32>
    %118 = arith.subf %112, %117 : vector<64x128xf32>
    %c7 = arith.constant 7 : index
    %c0_64 = arith.constant 0 : index
    %c0_65 = arith.constant 0 : index
    %119 = vector.load %arg4[%c7, %c0_64, %c0_65] : memref<8x64x64xf32, #tpu.memory_space<vmem>>, vector<1x64x64xf32>
    %120 = vector.shape_cast %119 : vector<1x64x64xf32> to vector<64x64xf32>
    %cst_66 = arith.constant dense<0.000000e+00> : vector<64x128xf32>
    %121 = tpu.matmul %120, %118, %cst_66 {dimension_numbers = #tpu.dot_dimension_numbers<[1], [0], [0], [1], [0, 0, 1, 1], [], []>} : vector<64x64xf32>, vector<64x128xf32>, vector<64x128xf32> -> vector<64x128xf32>
    %c7_67 = arith.constant 7 : index
    %c0_68 = arith.constant 0 : index
    %c0_69 = arith.constant 0 : index
    %122 = vector.load %arg5[%c7_67, %c0_68, %c0_69] : memref<8x64x1xf32, #tpu.memory_space<vmem>>, vector<1x64x1xf32>
    %123 = vector.shape_cast %122 : vector<1x64x1xf32> to vector<64x1xf32>
    %124 = vector.broadcast %123 : vector<64x1xf32> to vector<64x128xf32>
    %125 = arith.addf %121, %124 : vector<64x128xf32>
    %cst_70 = arith.constant 0.000000e+00 : f32
    %126 = vector.broadcast %cst_70 : f32 to vector<64x128xf32>
    %127 = arith.minimumf %125, %126 : vector<64x128xf32>
    %128 = math.absf %125 : vector<64x128xf32>
    %cst_71 = arith.constant 0.000000e+00 : f32
    %129 = vector.broadcast %cst_71 : f32 to vector<64x128xf32>
    %130 = arith.subf %129, %128 : vector<64x128xf32>
    %131 = math.exp %130 : vector<64x128xf32>
    %132 = math.log1p %131 : vector<64x128xf32>
    %133 = arith.subf %127, %132 : vector<64x128xf32>
    %c0_72 = arith.constant 0 : index
    %c0_73 = arith.constant 0 : index
    %134 = vector.load %arg6[%c0_72, %c0_73] : memref<16x64xf32, #tpu.memory_space<vmem>>, vector<16x64xf32>
    %cst_74 = arith.constant dense<0.000000e+00> : vector<16x128xf32>
    %135 = tpu.matmul %134, %133, %cst_74 {dimension_numbers = #tpu.dot_dimension_numbers<[1], [0], [0], [1], [0, 0, 1, 1], [], []>} : vector<16x64xf32>, vector<64x128xf32>, vector<16x128xf32> -> vector<16x128xf32>
    %c0_75 = arith.constant 0 : index
    %c0_76 = arith.constant 0 : index
    %136 = vector.load %arg7[%c0_75, %c0_76] : memref<16x1xf32, #tpu.memory_space<vmem>>, vector<16x1xf32>
    %137 = vector.broadcast %136 : vector<16x1xf32> to vector<16x128xf32>
    %138 = arith.addf %135, %137 : vector<16x128xf32>
    %c0_77 = arith.constant 0 : index
    %c0_78 = arith.constant 0 : index
    %139 = vector.load %arg8[%c0_77, %c0_78] : memref<16x128xf32, #tpu.memory_space<vmem>>, vector<16x128xf32>
    tpu.vector_store %arg8[%c0_77, %c0_78], %138 {strides = array<i32>} : memref<16x128xf32, #tpu.memory_space<vmem>>, vector<16x128xf32>,
    return
  }
  func.func @transform_0(%arg0: i32) -> (i32, i32) {
    %c0_i32 = arith.constant 0 : i32
    %c0_i32_0 = arith.constant 0 : i32
    return %c0_i32, %arg0 : i32, i32
  }
  func.func @transform_1(%arg0: i32) -> (i32, i32) {
    %c0_i32 = arith.constant 0 : i32
    %c0_i32_0 = arith.constant 0 : i32
    %c0_i32_1 = arith.constant 0 : i32
    return %c0_i32, %c0_i32_0 : i32, i32
  }
  func.func @transform_2(%arg0: i32) -> (i32, i32) {
    %c0_i32 = arith.constant 0 : i32
    %c0_i32_0 = arith.constant 0 : i32
    %c0_i32_1 = arith.constant 0 : i32
    return %c0_i32, %c0_i32_0 : i32, i32
  }
  func.func @transform_3(%arg0: i32) -> (i32, i32, i32) {
    %c0_i32 = arith.constant 0 : i32
    %c0_i32_0 = arith.constant 0 : i32
    %c0_i32_1 = arith.constant 0 : i32
    %c0_i32_2 = arith.constant 0 : i32
    return %c0_i32, %c0_i32_0, %c0_i32_1 : i32, i32, i32
  }
  func.func @transform_4(%arg0: i32) -> (i32, i32, i32) {
    %c0_i32 = arith.constant 0 : i32
    %c0_i32_0 = arith.constant 0 : i32
    %c0_i32_1 = arith.constant 0 : i32
    %c0_i32_2 = arith.constant 0 : i32
    return %c0_i32, %c0_i32_0, %c0_i32_1 : i32, i32, i32
  }
  func.func @transform_5(%arg0: i32) -> (i32, i32) {
    %c0_i32 = arith.constant 0 : i32
    %c0_i32_0 = arith.constant 0 : i32
    %c0_i32_1 = arith.constant 0 : i32
    return %c0_i32, %c0_i32_0 : i32, i32
  }
  func.func @transform_6(%arg0: i32) -> (i32, i32) {
    %c0_i32 = arith.constant 0 : i32
    %c0_i32_0 = arith.constant 0 : i32
    %c0_i32_1 = arith.constant 0 : i32
    return %c0_i32, %c0_i32_0 : i32, i32
  }
  func.func @transform_7(%arg0: i32) -> (i32, i32) {
    %c0_i32 = arith.constant 0 : i32
    %c0_i32_0 = arith.constant 0 : i32
    return %c0_i32, %arg0 : i32, i32
  }
}

</mosaic_0001>

<bundles_post_ra>
// kernel: metric_pinn_forward.1
= control target key start
LH: loop header
LB: loop body
LE: loop exit
PB: predicated region body
PF: predicated region fallthrough
CT: control target
= control target key end

     0   :  { %v3954_v3 = vmov 0   ;;  %vm84_vm0 = vcmask 64512   ;;  %s5065_s0 = inlined_call_operand.vmem [shape: f32[8,128], index: 0, kind: input, shape index: {}]   ;;  %s5066_s1 = inlined_call_operand.vmem [shape: f32[64,8], index: 1, kind: input, shape index: {}]   ;;  %s5067_s2 = inlined_call_operand.vmem [shape: f32[64,1], index: 2, kind: input, shape index: {}]   ;;  %s5068_s3 = inlined_call_operand.vmem [shape: f32[8,64,64], index: 3, kind: input, shape index: {}]   ;;  %s5069_s4 = inlined_call_operand.vmem [shape: f32[8,64,1], index: 4, kind: input, shape index: {}]   ;;  %s5070_s5 = inlined_call_operand.vmem [shape: f32[16,64], index: 5, kind: input, shape index: {}]   ;;  %s5071_s6 = inlined_call_operand.vmem [shape: f32[16,1], index: 6, kind: input, shape index: {}]   ;;  %s5072_s7 = inlined_call_operand.hbm [shape: f32[16,128], index: 7, kind: output, shape index: {}]  }
   0x1   :  { %v27_v0 = vld [vmem:[%s5065_s0] sm:$0xff]  ;;  %v38_v1 = vld [vmem:[%s5067_s2 + $0x10] sm:$0xff]  ;;  %3641 = vset.pattern.permute.xlu1 %v3954_v3  ;;  %3640 = vset.pattern.permute.xlu0 %v3954_v3  ;;  %v29_v5 = vld [vmem:[%s5066_s1 + $0x8] sm:$0xff] }
   0x2   :  { %v36_v2 = vld [vmem:[%s5067_s2] sm:$0xff]  ;;  %3235 = vmatprep.subr.mxu0 %v27_v0  ;;  %56 = vperm.xlu1 %3641, %v38_v1   ;;  %v39_v6 = vld [vmem:[%s5067_s2 + $0x18] sm:$0xff]  ;;  %v30_v7 = vld [vmem:[%s5066_s1 + $0x10] sm:$0xff] }
   0x3   :  { %v28_v4 = vld [vmem:[%s5066_s1] sm:$0xff]  ;;  %46 = vperm.xlu0 %3640, %v36_v2   ;;  %3236 = vmatpush3.msra.mxu0 %v27_v0  ;;  %v37_v8 = vld [vmem:[%s5067_s2 + $0x8] sm:$0xff]  ;;  %v31_v9 = vld [vmem:[%s5066_s1 + $0x18] sm:$0xff] }
   0x4   :  { %3237 = vmatprep.mubr.msk.f32.mxu0 %vm84_vm0, %v28_v4  ;;  %v41_v10 = vld [vmem:[%s5067_s2 + $0x28] sm:$0xff]  ;;  %v32_v11 = vld [vmem:[%s5066_s1 + $0x20] sm:$0xff]  ;;  %v43_v14 = vld [vmem:[%s5067_s2 + $0x38] sm:$0xff] }
   0x5   :  { %3238 = vmatmul.mubr.msk.f32.vlgmr.msra.gmra.mrb[0].mxu0 %vm84_vm0, %v29_v5  ;;  %v40_v12 = vld [vmem:[%s5067_s2 + $0x20] sm:$0xff]  ;;  %v33_v13 = vld [vmem:[%s5066_s1 + $0x28] sm:$0xff]  ;;  %v34_v15 = vld [vmem:[%s5066_s1 + $0x30] sm:$0xff] }
   0x6   :  { %61 = vperm.xlu1 %3641, %v39_v6   ;;  %3240 = vmatprep.mubr.msk.f32.mxu0 %vm84_vm0, %v30_v7  ;;  %v42_v16 = vld [vmem:[%s5067_s2 + $0x30] sm:$0xff]  ;;  %v35_v17 = vld [vmem:[%s5066_s1 + $0x38] sm:$0xff]  ;;  %v343_v18 = vld [vmem:[%s5069_s4 + $0x8] sm:$0xff] }
   0x7   :  { %51 = vperm.xlu0 %3640, %v37_v8   ;;  %v342_v19 = vld [vmem:[%s5069_s4] sm:$0xff]  ;;  %v345_v20 = vld [vmem:[%s5069_s4 + $0x18] sm:$0xff]  ;;  %v344_v21 = vld [vmem:[%s5069_s4 + $0x10] sm:$0xff] }
   0x8   :  { %v347_v22 = vld [vmem:[%s5069_s4 + $0x28] sm:$0xff]  ;;  %v346_v23 = vld [vmem:[%s5069_s4 + $0x20] sm:$0xff]  ;;  %v349_v24 = vld [vmem:[%s5069_s4 + $0x38] sm:$0xff] }
   0x9   :  { %3241 = vmatmul.mubr.msk.f32.gmra.mrb[2].mxu0 %vm84_vm0, %v31_v9 }
   0xa   :  { %71 = vperm.xlu1 %3641, %v41_v10   ;;  %3243 = vmatprep.mubr.msk.f32.mxu0 %vm84_vm0, %v32_v11 }
   0xb   :  { %66 = vperm.xlu0 %3640, %v40_v12  }
   0xd   :  { %3244 = vmatmul.mubr.msk.f32.gmra.mrb[4].mxu0 %vm84_vm0, %v33_v13 }
   0xe   :  { %81 = vperm.xlu1 %3641, %v43_v14   ;;  %3246 = vmatprep.mubr.msk.f32.mxu0 %vm84_vm0, %v34_v15 }
   0xf   :  { %76 = vperm.xlu0 %3640, %v42_v16  }
  0x11   :  { %3247 = vmatmul.mubr.msk.f32.gmra.mrb[6].mxu0 %vm84_vm0, %v35_v17 }
  0x12   :  { %357 = vperm.xlu1 %3641, %v343_v18  }
  0x13   :  { %352 = vperm.xlu0 %3640, %v342_v19  }
  0x16   :  { %367 = vperm.xlu1 %3641, %v345_v20  }
  0x17   :  { %362 = vperm.xlu0 %3640, %v344_v21  }
  0x1a   :  { %377 = vperm.xlu1 %3641, %v347_v22  }
  0x1b   :  { %372 = vperm.xlu0 %3640, %v346_v23  }
  0x1c   :  { %12 = vsyncpa [#allocation3], 0  ;;  %v348_v25 = vld [vmem:[%s5069_s4 + $0x30] sm:$0xff]  ;;  %v2927_v26 = vld [vmem:[%s5069_s4 + $0x48] sm:$0xff]  ;;  %vm390_vm1 = vcmask 523264   ;;  %s3955_s27 = smov [#allocation2]  }
  0x1d   :  { %v2926_v27 = vld [vmem:[%s5069_s4 + $0x40] sm:$0xff]  ;;  %v2929_v28 = vld [vmem:[%s5069_s4 + $0x58] sm:$0xff]  ;;  %v2928_v29 = vld [vmem:[%s5069_s4 + $0x50] sm:$0xff]  ;;  %s2891_s28 = sshll.u32 %s3955_s27, 4  ;;  %s2892_s28 = int_to_ptr.vmem [resolvable:$true] %s2891_s28 }
  0x1e   :  { %387 = vperm.xlu1 %3641, %v349_v24   ;;  %v2931_v30 = vld [vmem:[%s5069_s4 + $0x68] sm:$0xff]  ;;  %v2930_v31 = vld [vmem:[%s5069_s4 + $0x60] sm:$0xff]  ;;  %v2933_v32 = vld [vmem:[%s5069_s4 + $0x78] sm:$0xff]  ;;  %s3930_s29 = scalar_lea.vmem %s2892_s28, 256  ;;  %p3935_p1 = scmp.lt.s32.totalorder %s2892_s28, %s2892_s28 }
  0x1f   :  { %382 = vperm.xlu0 %3640, %v348_v25   ;;  %v2932_v33 = vld [vmem:[%s5069_s4 + $0x70] sm:$0xff]  ;;  %v2951_v34 = vld [vmem:[%s5069_s4 + $0x88] sm:$0xff]  ;;  %v2950_v35 = vld [vmem:[%s5069_s4 + $0x80] sm:$0xff]  ;;  %p3931_p0 = scmp.ne.s32.totalorder %s2892_s28, %s3930_s29  ;;  %p3936_p2 = scmp.lt.s32.totalorder %s3930_s29, %s3930_s29 }
  0x20   :  { %v2953_v36 = vld [vmem:[%s5069_s4 + $0x98] sm:$0xff]  ;;  %v2952_v37 = vld [vmem:[%s5069_s4 + $0x90] sm:$0xff]  ;;  %v2955_v38 = vld [vmem:[%s5069_s4 + $0xa8] sm:$0xff] }
  0x21   :  { %v2954_v39 = vld [vmem:[%s5069_s4 + $0xa0] sm:$0xff]  ;;  %v2957_v40 = vld [vmem:[%s5069_s4 + $0xb8] sm:$0xff]  ;;  %v2956_v41 = vld [vmem:[%s5069_s4 + $0xb0] sm:$0xff]  ;;  %p3937_p3 = por %p3936_p2, %p3935_p1 }
  0x22   :  { %665 = vperm.xlu1 %3641, %v2927_v26   ;;  %v2975_v42 = vld [vmem:[%s5069_s4 + $0xc8] sm:$0xff]  ;;  %v2974_v43 = vld [vmem:[%s5069_s4 + $0xc0] sm:$0xff]  ;;  %v2977_v44 = vld [vmem:[%s5069_s4 + $0xd8] sm:$0xff] }
  0x23   :  { %660 = vperm.xlu0 %3640, %v2926_v27   ;;  %v2976_v45 = vld [vmem:[%s5069_s4 + $0xd0] sm:$0xff]  ;;  %v2979_v46 = vld [vmem:[%s5069_s4 + $0xe8] sm:$0xff]  ;;  %v2978_v47 = vld [vmem:[%s5069_s4 + $0xe0] sm:$0xff]  ;;  %p3938_p4 = pnand %p3937_p3, %p3931_p0 }
  0x24   :  { %v2981_v48 = vld [vmem:[%s5069_s4 + $0xf8] sm:$0xff]  ;;  %v2980_v49 = vld [vmem:[%s5069_s4 + $0xf0] sm:$0xff]  ;;  %v2999_v50 = vld [vmem:[%s5069_s4 + $0x108] sm:$0xff] }
  0x25   :  { %v2998_v51 = vld [vmem:[%s5069_s4 + $0x100] sm:$0xff]  ;;  %v3001_v52 = vld [vmem:[%s5069_s4 + $0x118] sm:$0xff]  ;;  %v3000_v53 = vld [vmem:[%s5069_s4 + $0x110] sm:$0xff] }
  0x26   :  { %675 = vperm.xlu1 %3641, %v2929_v28   ;;  %v3003_v54 = vld [vmem:[%s5069_s4 + $0x128] sm:$0xff]  ;;  %v3002_v55 = vld [vmem:[%s5069_s4 + $0x120] sm:$0xff]  ;;  %v3005_v56 = vld [vmem:[%s5069_s4 + $0x138] sm:$0xff] }
  0x27   :  { %670 = vperm.xlu0 %3640, %v2928_v29   ;;  %v3004_v57 = vld [vmem:[%s5069_s4 + $0x130] sm:$0xff]  ;;  %v3023_v58 = vld [vmem:[%s5069_s4 + $0x148] sm:$0xff]  ;;  %v3022_v59 = vld [vmem:[%s5069_s4 + $0x140] sm:$0xff] }
  0x28   :  { %v3025_v60 = vld [vmem:[%s5069_s4 + $0x158] sm:$0xff]  ;;  %v3024_v61 = vld [vmem:[%s5069_s4 + $0x150] sm:$0xff]  ;;  %v3027_v62 = vld [vmem:[%s5069_s4 + $0x168] sm:$0xff] }
  0x29   :  { %v3026_v63 = vld [vmem:[%s5069_s4 + $0x160] sm:$0xff]  ;;  %v3029_v0 = vld [vmem:[%s5069_s4 + $0x178] sm:$0xff]  ;;  %v3028_v1 = vld [vmem:[%s5069_s4 + $0x170] sm:$0xff] }
  0x2a   :  { %685 = vperm.xlu1 %3641, %v2931_v30   ;;  %v3047_v2 = vld [vmem:[%s5069_s4 + $0x188] sm:$0xff]  ;;  %v3046_v3 = vld [vmem:[%s5069_s4 + $0x180] sm:$0xff]  ;;  %v3049_v4 = vld [vmem:[%s5069_s4 + $0x198] sm:$0xff] }
  0x2b   :  { %680 = vperm.xlu0 %3640, %v2930_v31   ;;  %v3048_v5 = vld [vmem:[%s5069_s4 + $0x190] sm:$0xff]  ;;  %v3051_v6 = vld [vmem:[%s5069_s4 + $0x1a8] sm:$0xff]  ;;  %v3050_v7 = vld [vmem:[%s5069_s4 + $0x1a0] sm:$0xff] }
  0x2c   :  { %v3053_v8 = vld [vmem:[%s5069_s4 + $0x1b8] sm:$0xff]  ;;  %v3052_v9 = vld [vmem:[%s5069_s4 + $0x1b0] sm:$0xff]  ;;  %v3071_v10 = vld [vmem:[%s5069_s4 + $0x1c8] sm:$0xff] }
  0x2d   :  { %v3070_v11 = vld [vmem:[%s5069_s4 + $0x1c0] sm:$0xff]  ;;  %v3073_v12 = vld [vmem:[%s5069_s4 + $0x1d8] sm:$0xff]  ;;  %v3072_v13 = vld [vmem:[%s5069_s4 + $0x1d0] sm:$0xff] }
  0x2e   :  { %695 = vperm.xlu1 %3641, %v2933_v32   ;;  %v3075_v14 = vld [vmem:[%s5069_s4 + $0x1e8] sm:$0xff]  ;;  %v3074_v15 = vld [vmem:[%s5069_s4 + $0x1e0] sm:$0xff]  ;;  %v3077_v16 = vld [vmem:[%s5069_s4 + $0x1f8] sm:$0xff] }
  0x2f   :  { %690 = vperm.xlu0 %3640, %v2932_v33   ;;  %v3076_v17 = vld [vmem:[%s5069_s4 + $0x1f0] sm:$0xff]  ;;  %v2792_v18 = vld [vmem:[%s5071_s6 + $0x8] sm:$0xff]  ;;  %v334_v19 = vld [vmem:[%s5068_s3] sm:$0xff] }
  0x30   :  { %v2791_v20 = vld [vmem:[%s5071_s6] sm:$0xff]  ;;  %3265 = vmatprep.mubr.msk.f32.mxu1 %vm390_vm1, %v334_v19 }
  0x32   :  { %972 = vperm.xlu1 %3641, %v2951_v34  }
  0x33   :  { %967 = vperm.xlu0 %3640, %v2950_v35  }
  0x36   :  { %982 = vperm.xlu1 %3641, %v2953_v36  }
  0x37   :  { %977 = vperm.xlu0 %3640, %v2952_v37  }
  0x3a   :  { %992 = vperm.xlu1 %3641, %v2955_v38  }
  0x3b   :  { %987 = vperm.xlu0 %3640, %v2954_v39  }
  0x3e   :  { %1002 = vperm.xlu1 %3641, %v2957_v40  }
  0x3f   :  { %997 = vperm.xlu0 %3640, %v2956_v41  }
  0x42   :  { %1279 = vperm.xlu1 %3641, %v2975_v42  }
  0x43   :  { %1274 = vperm.xlu0 %3640, %v2974_v43  }
  0x46   :  { %1289 = vperm.xlu1 %3641, %v2977_v44  }
  0x47   :  { %1284 = vperm.xlu0 %3640, %v2976_v45  }
  0x4a   :  { %1299 = vperm.xlu1 %3641, %v2979_v46  }
  0x4b   :  { %1294 = vperm.xlu0 %3640, %v2978_v47  }
  0x4e   :  { %1309 = vperm.xlu1 %3641, %v2981_v48  }
  0x4f   :  { %1304 = vperm.xlu0 %3640, %v2980_v49  }
  0x52   :  { %1586 = vperm.xlu1 %3641, %v2999_v50  }
  0x53   :  { %1581 = vperm.xlu0 %3640, %v2998_v51  }
  0x56   :  { %1596 = vperm.xlu1 %3641, %v3001_v52  }
  0x57   :  { %1591 = vperm.xlu0 %3640, %v3000_v53  }
  0x5a   :  { %1606 = vperm.xlu1 %3641, %v3003_v54  }
  0x5b   :  { %1601 = vperm.xlu0 %3640, %v3002_v55  }
  0x5e   :  { %1616 = vperm.xlu1 %3641, %v3005_v56  }
  0x5f   :  { %1611 = vperm.xlu0 %3640, %v3004_v57  }
  0x62   :  { %1893 = vperm.xlu1 %3641, %v3023_v58  }
  0x63   :  { %1888 = vperm.xlu0 %3640, %v3022_v59  }
  0x66   :  { %1903 = vperm.xlu1 %3641, %v3025_v60  }
  0x67   :  { %1898 = vperm.xlu0 %3640, %v3024_v61  }
  0x6a   :  { %1913 = vperm.xlu1 %3641, %v3027_v62  }
  0x6b   :  { %1908 = vperm.xlu0 %3640, %v3026_v63  }
  0x6e   :  { %1923 = vperm.xlu1 %3641, %v3029_v0  }
  0x6f   :  { %1918 = vperm.xlu0 %3640, %v3028_v1  }
  0x72   :  { %2200 = vperm.xlu1 %3641, %v3047_v2  }
  0x73   :  { %2195 = vperm.xlu0 %3640, %v3046_v3  }
  0x76   :  { %2210 = vperm.xlu1 %3641, %v3049_v4  }
  0x77   :  { %2205 = vperm.xlu0 %3640, %v3048_v5  }
  0x7a   :  { %2220 = vperm.xlu1 %3641, %v3051_v6  }
  0x7b   :  { %2215 = vperm.xlu0 %3640, %v3050_v7  }
  0x7e   :  { %2230 = vperm.xlu1 %3641, %v3053_v8  }
  0x7f   :  { %2225 = vperm.xlu0 %3640, %v3052_v9  }
  0x81   :  { %v57_v21 = vpop.permute.xlu1 %56 }
  0x82   :  { %2507 = vperm.xlu1 %3641, %v3071_v10   ;;  %v47_v22 = vpop.permute.xlu0 %46 }
  0x83   :  { %2502 = vperm.xlu0 %3640, %v3070_v11  }
  0x85   :  { %v62_v23 = vpop.permute.xlu1 %61 }
  0x86   :  { %2517 = vperm.xlu1 %3641, %v3073_v12   ;;  %v52_v24 = vpop.permute.xlu0 %51 }
  0x87   :  { %2512 = vperm.xlu0 %3640, %v3072_v13  }
  0x89   :  { %v72_v35 = vpop.permute.xlu1 %71 }
  0x8a   :  { %2527 = vperm.xlu1 %3641, %v3075_v14   ;;  %v67_v38 = vpop.permute.xlu0 %66 }
  0x8b   :  { %2522 = vperm.xlu0 %3640, %v3074_v15  }
  0x8d   :  { %v82_v51 = vpop.permute.xlu1 %81 }
  0x8e   :  { %2537 = vperm.xlu1 %3641, %v3077_v16   ;;  %v77_v55 = vpop.permute.xlu0 %76 }
  0x8f   :  { %2532 = vperm.xlu0 %3640, %v3076_v17  }
  0x92   :  { %2800 = vperm.xlu1 %3641, %v2792_v18  }
  0x93   :  { %2795 = vperm.xlu0 %3640, %v2791_v20  }
  0xd8   :  { %v3239_v25 = vpop.f32.mrb[0].mxu0 }
  0xd9   :  { %v4259_v26 = vadd.f32 %v3239_v25, %v52_v24  ;;  %v175_v27 = vpop.f32.mrb[1].mxu0 }
  0xda   :  { %v4261_v28 = vadd.f32 %v175_v27, %v47_v22 }
  0xdb   :  { %v223_v29 = vand.u32 2147483647, %v4259_v26  ;;  %v215_v18 = vmin.f32 %v4259_v26, 0.0 }
  0xdc   :  { %v222_v30 = vand.u32 2147483647, %v4261_v28  ;;  %v3242_v31 = vpop.f32.mrb[2].mxu0  ;;  %v214_v22 = vmin.f32 %v4261_v28, 0.0 }
  0xdd   :  { %v231_v32 = vsub.f32 0.0, %v223_v29  ;;  %v4265_v33 = vadd.f32 %v3242_v31, %v62_v23  ;;  %v185_v34 = vpop.f32.mrb[3].mxu0 }
  0xde   :  { %v230_v36 = vsub.f32 0.0, %v222_v30  ;;  %v4267_v37 = vadd.f32 %v185_v34, %v57_v21 }
  0xdf   :  { %v240_v39 = vmul.f32 1.442695, %v231_v32  ;;  %v225_v40 = vand.u32 2147483647, %v4265_v33  ;;  %v217_v27 = vmin.f32 %v4265_v33, 0.0 }
  0xe0   :  { %v238_v41 = vmul.f32 1.442695, %v230_v36  ;;  %v224_v42 = vand.u32 2147483647, %v4267_v37  ;;  %v3245_v43 = vpop.f32.mrb[4].mxu0  ;;  %v216_v30 = vmin.f32 %v4267_v37, 0.0 }
  0xe1   :  { %3642 = vpow2.f32 %v240_v39  ;;  %v233_v44 = vsub.f32 0.0, %v225_v40  ;;  %v4271_v45 = vadd.f32 %v3245_v43, %v72_v35  ;;  %v195_v46 = vpop.f32.mrb[5].mxu0 }
  0xe2   :  { %3644 = vpow2.f32 %v238_v41  ;;  %v232_v47 = vsub.f32 0.0, %v224_v42  ;;  %v4273_v48 = vadd.f32 %v195_v46, %v67_v38  ;;  %v340_v42 = vld [vmem:[%s5068_s3 + $0x30] sm:$0xff] }
  0xe3   :  { %v244_v49 = vmul.f32 1.442695, %v233_v44  ;;  %v227_v50 = vand.u32 2147483647, %v4271_v45  ;;  %v219_v32 = vmin.f32 %v4271_v45, 0.0  ;;  %v2918_v44 = vld [vmem:[%s5068_s3 + $0x40] sm:$0xff] }
  0xe4   :  { %v242_v52 = vmul.f32 1.442695, %v232_v47  ;;  %v226_v53 = vand.u32 2147483647, %v4273_v48  ;;  %v3248_v54 = vpop.f32.mrb[6].mxu0  ;;  %3293 = vmatprep.mubr.msk.f32.mxu0 %vm390_vm1, %v2918_v44 }
  0xe5   :  { %3646 = vpow2.f32 %v244_v49  ;;  %v235_v56 = vsub.f32 0.0, %v227_v50  ;;  %v4277_v57 = vadd.f32 %v3248_v54, %v82_v51  ;;  %v205_v58 = vpop.f32.mrb[7].mxu0 }
  0xe6   :  { %3648 = vpow2.f32 %v242_v52  ;;  %v234_v59 = vsub.f32 0.0, %v226_v53  ;;  %v4279_v60 = vadd.f32 %v205_v58, %v77_v55 }
  0xe7   :  { %v248_v61 = vmul.f32 1.442695, %v235_v56  ;;  %v229_v62 = vand.u32 2147483647, %v4277_v57 }
  0xe8   :  { %v246_v63 = vmul.f32 1.442695, %v234_v59  ;;  %v228_v0 = vand.u32 2147483647, %v4279_v60 }
  0xe9   :  { %3650 = vpow2.f32 %v248_v61  ;;  %v237_v1 = vsub.f32 0.0, %v229_v62 }
  0xea   :  { %3652 = vpow2.f32 %v246_v63  ;;  %v236_v2 = vsub.f32 0.0, %v228_v0 }
  0xeb   :  { %v3643_v3 = vpop.eup %3642  ;;  %v252_v4 = vmul.f32 1.442695, %v237_v1 }
  0xec   :  { %v3645_v5 = vpop.eup %3644  ;;  %v250_v6 = vmul.f32 1.442695, %v236_v2  ;;  %v263_v7 = vadd.f32 1.0, %v3643_v3  ;;  %v266_v16 = vmul.f32 -0.5, %v3643_v3  ;;  %v269_v21 = vand.u32 2147483647, %v3643_v3 }
  0xed   :  { %3654 = vpow2.f32 %v252_v4  ;;  %v254_v8 = vadd.f32 1.0, %v3645_v5  ;;  %v257_v13 = vmul.f32 -0.5, %v3645_v5  ;;  %v260_v25 = vand.u32 2147483647, %v3645_v5 }
  0xee   :  { %3656 = vpow2.f32 %v250_v6  ;;  %v267_v34 = vadd.f32 1.0, %v266_v16  ;;  %vm4304_vm2 = vcmp.lt.f32.partialorder %v269_v21, 0.0004427343  ;;  %v218_v4 = vmin.f32 %v4273_v48, 0.0 }
  0xef   :  { %v3647_v9 = vpop.eup %3646  ;;  %3658 = vlog2.f32 %v254_v8  ;;  %v258_v24 = vadd.f32 1.0, %v257_v13  ;;  %vm4310_vm3 = vcmp.lt.f32.partialorder %v260_v25, 0.0004427343 }
  0xf0   :  { %v4283_v10 = vpop.eup %3648  ;;  %v281_v11 = vadd.f32 1.0, %v3647_v9  ;;  %3660 = vlog2.f32 %v263_v7  ;;  %v284_v15 = vmul.f32 -0.5, %v3647_v9  ;;  %v287_v29 = vand.u32 2147483647, %v3647_v9 }
  0xf1   :  { %v272_v12 = vadd.f32 1.0, %v4283_v10  ;;  %v275_v19 = vmul.f32 -0.5, %v4283_v10  ;;  %v278_v39 = vand.u32 2147483647, %v4283_v10  ;;  %v259_v41 = vmul.f32 %v3645_v5, %v258_v24 }
  0xf2   :  { %3662 = vlog2.f32 %v281_v11  ;;  %v285_v26 = vadd.f32 1.0, %v284_v15  ;;  %vm4314_vm4 = vcmp.lt.f32.partialorder %v287_v29, 0.0004427343  ;;  %v268_v50 = vmul.f32 %v3643_v3, %v267_v34 }
  0xf3   :  { %v4286_v14 = vpop.eup %3650  ;;  %3664 = vlog2.f32 %v272_v12  ;;  %v276_v28 = vadd.f32 1.0, %v275_v19  ;;  %vm279_vm5 = vcmp.lt.f32.partialorder %v278_v39, 0.0004427343 }
  0xf4   :  { %v4288_v17 = vpop.eup %3652  ;;  %v299_v20 = vadd.f32 1.0, %v4286_v14  ;;  %v302_v36 = vmul.f32 -0.5, %v4286_v14  ;;  %v286_v47 = vmul.f32 %v3647_v9, %v285_v26  ;;  %v305_v54 = vand.u32 2147483647, %v4286_v14 }
  0xf5   :  { %v290_v23 = vadd.f32 1.0, %v4288_v17  ;;  %v293_v45 = vmul.f32 -0.5, %v4288_v17  ;;  %v277_v52 = vmul.f32 %v4283_v10, %v276_v28  ;;  %v296_v5 = vand.u32 2147483647, %v4288_v17 }
  0xf6   :  { %3666 = vlog2.f32 %v299_v20  ;;  %v303_v53 = vadd.f32 1.0, %v302_v36  ;;  %vm4331_vm6 = vcmp.lt.f32.partialorder %v305_v54, 0.0004427343  ;;  %v221_v26 = vmin.f32 %v4277_v57, 0.0  ;;  %v335_v57 = vld [vmem:[%s5068_s3 + $0x8] sm:$0xff] }
  0xf7   :  { %v4297_v31 = vpop.eup %3654  ;;  %3668 = vlog2.f32 %v290_v23  ;;  %v294_v0 = vadd.f32 1.0, %v293_v45  ;;  %vm297_vm7 = vcmp.lt.f32.partialorder %v296_v5, 0.0004427343  ;;  %v358_v45 = vpop.permute.xlu1 %357 }
  0xf8   :  { %v4300_v35 = vpop.eup %3656  ;;  %v317_v38 = vadd.f32 1.0, %v4297_v31  ;;  %v320_v59 = vmul.f32 -0.5, %v4297_v31  ;;  %v304_v15 = vmul.f32 %v4286_v14, %v303_v53  ;;  %v323_v48 = vand.u32 2147483647, %v4297_v31 }
  0xf9   :  { %v3659_v37 = vpop.eup %3658  ;;  %v308_v40 = vadd.f32 1.0, %v4300_v35  ;;  %v311_v1 = vmul.f32 -0.5, %v4300_v35  ;;  %v295_v19 = vmul.f32 %v4288_v17, %v294_v0 }
  0xfa   :  { %v3661_v43 = vpop.eup %3660  ;;  %3670 = vlog2.f32 %v317_v38  ;;  %v256_v46 = vmul.f32 0.6931472, %v3659_v37  ;;  %v321_v16 = vadd.f32 1.0, %v320_v59  ;;  %vm324_vm8 = vcmp.lt.f32.partialorder %v323_v48, 0.0004427343 }
  0xfb   :  { %3672 = vlog2.f32 %v308_v40  ;;  %v265_v49 = vmul.f32 0.6931472, %v3661_v43  ;;  %v312_v20 = vadd.f32 1.0, %v311_v1  ;;  %v220_v38 = vmin.f32 %v4279_v60, 0.0  ;;  %v337_v60 = vld [vmem:[%s5068_s3 + $0x18] sm:$0xff] }
  0xfc   :  { %v3663_v51 = vpop.eup %3662  ;;  %v262_v55 = vsel %vm4310_vm3, %v259_v41, %v256_v46  ;;  %v322_v17 = vmul.f32 %v4297_v31, %v321_v16  ;;  %v336_v31 = vld [vmem:[%s5068_s3 + $0x10] sm:$0xff]  ;;  %v339_v41 = vld [vmem:[%s5068_s3 + $0x28] sm:$0xff]  ;;  %v341_v43 = vld [vmem:[%s5068_s3 + $0x38] sm:$0xff]  ;;  %v353_v46 = vpop.permute.xlu0 %352 }
  0xfd   :  { %v3665_v56 = vpop.eup %3664  ;;  %v283_v58 = vmul.f32 0.6931472, %v3663_v51  ;;  %v271_v61 = vsel %vm4304_vm2, %v268_v50, %v265_v49  ;;  %v326_v62 = vsub.f32 %v214_v22, %v262_v55  ;;  %v314_v22 = vand.u32 2147483647, %v4300_v35 }
  0xfe   :  { %v274_v63 = vmul.f32 0.6931472, %v3665_v56  ;;  %v327_v2 = vsub.f32 %v215_v18, %v271_v61  ;;  %v313_v28 = vmul.f32 %v4300_v35, %v312_v20  ;;  %v338_v35 = vld [vmem:[%s5068_s3 + $0x20] sm:$0xff] }
  0xff   :  { %v289_v3 = vsel %vm4314_vm4, %v286_v47, %v283_v58  ;;  %vm315_vm9 = vcmp.lt.f32.partialorder %v314_v22, 0.0004427343  ;;  %v368_v47 = vpop.permute.xlu1 %367 }
 0x100   :  { %v3667_v6 = vpop.eup %3666  ;;  %v329_v7 = vsub.f32 %v217_v27, %v289_v3  ;;  %v280_v8 = vsel %vm279_vm5, %v277_v52, %v274_v63  ;;  %v3492_v10 = vpack.c.bf16 %v327_v2, %v326_v62  ;;  %v363_v53 = vpop.permute.xlu0 %362 }
 0x101   :  { %v3669_v11 = vpop.eup %3668  ;;  %v328_v12 = vsub.f32 %v216_v30, %v280_v8  ;;  %v301_v13 = vmul.f32 0.6931472, %v3667_v6 }
 0x102   :  { %v292_v18 = vmul.f32 0.6931472, %v3669_v11  ;;  %3493 = vmatprep.subr.bf16.mxu1 %v3492_v10 }
 0x103   :  { %v307_v21 = vsel %vm4331_vm6, %v304_v15, %v301_v13  ;;  %3495 = vmatpush3.bf16.msra.mxu1 %v3492_v10  ;;  %v3496_v23 = vpack.c.bf16 %v329_v7, %v328_v12  ;;  %v378_v62 = vpop.permute.xlu1 %377 }
 0x104   :  { %v3671_v24 = vpop.eup %3670  ;;  %v331_v25 = vsub.f32 %v219_v32, %v307_v21  ;;  %v298_v27 = vsel %vm297_vm7, %v295_v19, %v292_v18  ;;  %v373_v6 = vpop.permute.xlu0 %372 }
 0x105   :  { %v3673_v14 = vpop.eup %3672  ;;  %v330_v29 = vsub.f32 %v218_v4, %v298_v27  ;;  %v319_v30 = vmul.f32 0.6931472, %v3671_v24  ;;  %3497 = vmatprep.subr.bf16.mxu1 %v3496_v23 }
 0x106   :  { %v310_v34 = vmul.f32 0.6931472, %v3673_v14 }
 0x107   :  { %v325_v36 = vsel %vm324_vm8, %v322_v17, %v319_v30  ;;  %3499 = vmatpush3.bf16.msra.mxu1 %v3496_v23  ;;  %v3500_v33 = vpack.c.bf16 %v331_v25, %v330_v29  ;;  %v388_v15 = vpop.permute.xlu1 %387 }
 0x108   :  { %v333_v32 = vsub.f32 %v221_v26, %v325_v36  ;;  %v316_v37 = vsel %vm315_vm9, %v313_v28, %v310_v34  ;;  %v383_v25 = vpop.permute.xlu0 %382 }
 0x109   :  { %v332_v39 = vsub.f32 %v220_v38, %v316_v37  ;;  %3501 = vmatprep.subr.bf16.mxu1 %v3500_v33 }
 0x10b   :  { %3503 = vmatpush3.bf16.msra.mxu1 %v3500_v33  ;;  %v3504_v40 = vpack.c.bf16 %v333_v32, %v332_v39 }
 0x10d   :  { %3505 = vmatprep.subr.bf16.mxu1 %v3504_v40 }
 0x10f   :  { %3507 = vmatpush3.bf16.msra.mxu1 %v3504_v40 }
 0x112   :  { %3266 = vmatmul.mubr.msk.f32.vlgmr.msra.gmra.mrb[0].mxu1 %vm390_vm1, %v335_v57 }
 0x113   :  { %3268 = vmatprep.mubr.msk.f32.mxu1 %vm390_vm1, %v336_v31 }
 0x116   :  { %3269 = vmatmul.mubr.msk.f32.gmra.mrb[2].mxu1 %vm390_vm1, %v337_v60 }
 0x117   :  { %3271 = vmatprep.mubr.msk.f32.mxu1 %vm390_vm1, %v338_v35 }
 0x11a   :  { %3272 = vmatmul.mubr.msk.f32.gmra.mrb[4].mxu1 %vm390_vm1, %v339_v41 }
 0x11b   :  { %3274 = vmatprep.mubr.msk.f32.mxu1 %vm390_vm1, %v340_v42 }
 0x11e   :  { %3275 = vmatmul.mubr.msk.f32.gmra.mrb[6].mxu1 %vm390_vm1, %v341_v43 }
 0x1e5   :  { %v3267_v49 = vpop.f32.mrb[0].mxu1 }
 0x1e6   :  { %v4377_v50 = vadd.f32 %v3267_v49, %v358_v45  ;;  %v481_v51 = vpop.f32.mrb[1].mxu1 }
 0x1e7   :  { %v4379_v52 = vadd.f32 %v481_v51, %v353_v46 }
 0x1e8   :  { %v529_v54 = vand.u32 2147483647, %v4377_v50 }
 0x1e9   :  { %v528_v55 = vand.u32 2147483647, %v4379_v52  ;;  %v3270_v56 = vpop.f32.mrb[2].mxu1 }
 0x1ea   :  { %v537_v58 = vsub.f32 0.0, %v529_v54  ;;  %v4383_v59 = vadd.f32 %v3270_v56, %v368_v47  ;;  %v491_v61 = vpop.f32.mrb[3].mxu1  ;;  %v521_v47 = vmin.f32 %v4377_v50, 0.0 }
 0x1eb   :  { %v536_v63 = vsub.f32 0.0, %v528_v55  ;;  %v4385_v0 = vadd.f32 %v491_v61, %v363_v53  ;;  %v520_v53 = vmin.f32 %v4379_v52, 0.0 }
 0x1ec   :  { %v546_v1 = vmul.f32 1.442695, %v537_v58  ;;  %v531_v2 = vand.u32 2147483647, %v4383_v59  ;;  %v523_v55 = vmin.f32 %v4383_v59, 0.0 }
 0x1ed   :  { %v544_v3 = vmul.f32 1.442695, %v536_v63  ;;  %v530_v4 = vand.u32 2147483647, %v4385_v0  ;;  %v3273_v5 = vpop.f32.mrb[4].mxu1 }
 0x1ee   :  { %3674 = vpow2.f32 %v546_v1  ;;  %v539_v7 = vsub.f32 0.0, %v531_v2  ;;  %v4389_v8 = vadd.f32 %v3273_v5, %v378_v62  ;;  %v501_v9 = vpop.f32.mrb[5].mxu1 }
 0x1ef   :  { %3676 = vpow2.f32 %v544_v3  ;;  %v538_v10 = vsub.f32 0.0, %v530_v4  ;;  %v4391_v11 = vadd.f32 %v501_v9, %v373_v6 }
 0x1f0   :  { %v550_v12 = vmul.f32 1.442695, %v539_v7  ;;  %v533_v13 = vand.u32 2147483647, %v4389_v8  ;;  %v522_v7 = vmin.f32 %v4385_v0, 0.0 }
 0x1f1   :  { %v548_v16 = vmul.f32 1.442695, %v538_v10  ;;  %v532_v18 = vand.u32 2147483647, %v4391_v11  ;;  %v3276_v19 = vpop.f32.mrb[6].mxu1 }
 0x1f2   :  { %3678 = vpow2.f32 %v550_v12  ;;  %v541_v48 = vsub.f32 0.0, %v533_v13  ;;  %v4395_v20 = vadd.f32 %v3276_v19, %v388_v15  ;;  %v511_v21 = vpop.f32.mrb[7].mxu1 }
 0x1f3   :  { %3680 = vpow2.f32 %v548_v16  ;;  %v540_v22 = vsub.f32 0.0, %v532_v18  ;;  %v4398_v29 = vadd.f32 %v511_v21, %v383_v25 }
 0x1f4   :  { %v554_v23 = vmul.f32 1.442695, %v541_v48  ;;  %v535_v24 = vand.u32 2147483647, %v4395_v20 }
 0x1f5   :  { %v552_v27 = vmul.f32 1.442695, %v540_v22  ;;  %v534_v36 = vand.u32 2147483647, %v4398_v29 }
 0x1f6   :  { %3682 = vpow2.f32 %v554_v23  ;;  %v543_v14 = vsub.f32 0.0, %v535_v24 }
 0x1f7   :  { %3684 = vpow2.f32 %v552_v27  ;;  %v542_v57 = vsub.f32 0.0, %v534_v36 }
 0x1f8   :  { %v3675_v30 = vpop.eup %3674  ;;  %v558_v17 = vmul.f32 1.442695, %v543_v14 }
 0x1f9   :  { %v3677_v26 = vpop.eup %3676  ;;  %v569_v34 = vadd.f32 1.0, %v3675_v30  ;;  %v572_v32 = vmul.f32 -0.5, %v3675_v30  ;;  %v575_v41 = vand.u32 2147483647, %v3675_v30  ;;  %v556_v46 = vmul.f32 1.442695, %v542_v57 }
 0x1fa   :  { %v560_v28 = vadd.f32 1.0, %v3677_v26  ;;  %3686 = vpow2.f32 %v558_v17  ;;  %v563_v39 = vmul.f32 -0.5, %v3677_v26  ;;  %v566_v54 = vand.u32 2147483647, %v3677_v26 }
 0x1fb   :  { %3688 = vlog2.f32 %v569_v34  ;;  %v573_v35 = vadd.f32 1.0, %v572_v32  ;;  %vm4412_vm10 = vcmp.lt.f32.partialorder %v575_v41, 0.0004427343 }
 0x1fc   :  { %v3679_v38 = vpop.eup %3678  ;;  %3690 = vlog2.f32 %v560_v28  ;;  %v564_v44 = vadd.f32 1.0, %v563_v39  ;;  %vm567_vm11 = vcmp.lt.f32.partialorder %v566_v54, 0.0004427343 }
 0x1fd   :  { %v3681_v33 = vpop.eup %3680  ;;  %v587_v37 = vadd.f32 1.0, %v3679_v38  ;;  %v590_v42 = vmul.f32 -0.5, %v3679_v38  ;;  %v574_v58 = vmul.f32 %v3675_v30, %v573_v35  ;;  %v593_v63 = vand.u32 2147483647, %v3679_v38 }
 0x1fe   :  { %v578_v40 = vadd.f32 1.0, %v3681_v33  ;;  %v581_v49 = vmul.f32 -0.5, %v3681_v33  ;;  %v565_v2 = vmul.f32 %v3677_v26, %v564_v44  ;;  %v584_v9 = vand.u32 2147483647, %v3681_v33 }
 0x1ff   :  { %3692 = vlog2.f32 %v587_v37  ;;  %v591_v62 = vadd.f32 1.0, %v590_v42  ;;  %vm594_vm12 = vcmp.lt.f32.partialorder %v593_v63, 0.0004427343  ;;  %v526_v63 = vmin.f32 %v4398_v29, 0.0  ;;  %v2922_v29 = vld [vmem:[%s5068_s3 + $0x60] sm:$0xff] }
 0x200   :  { %v4401_v31 = vpop.eup %3682  ;;  %3694 = vlog2.f32 %v578_v40  ;;  %v582_v52 = vadd.f32 1.0, %v581_v49  ;;  %vm585_vm13 = vcmp.lt.f32.partialorder %v584_v9, 0.0004427343  ;;  %v524_v40 = vmin.f32 %v4391_v11, 0.0 }
 0x201   :  { %v4403_v60 = vpop.eup %3684  ;;  %v605_v43 = vadd.f32 1.0, %v4401_v31  ;;  %v608_v3 = vmul.f32 -0.5, %v4401_v31  ;;  %v592_v15 = vmul.f32 %v3679_v38, %v591_v62  ;;  %v611_v21 = vand.u32 2147483647, %v4401_v31 }
 0x202   :  { %v596_v45 = vadd.f32 1.0, %v4403_v60  ;;  %v599_v5 = vmul.f32 -0.5, %v4403_v60  ;;  %v583_v23 = vmul.f32 %v3681_v33, %v582_v52  ;;  %v602_v0 = vand.u32 2147483647, %v4403_v60  ;;  %v2924_v52 = vld [vmem:[%s5068_s3 + $0x70] sm:$0xff] }
 0x203   :  { %3696 = vlog2.f32 %v605_v43  ;;  %v609_v48 = vadd.f32 1.0, %v608_v3  ;;  %v525_v38 = vmin.f32 %v4389_v8, 0.0  ;;  %vm612_vm14 = vcmp.lt.f32.partialorder %v611_v21, 0.0004427343  ;;  %v2920_v3 = vld [vmem:[%s5068_s3 + $0x50] sm:$0xff] }
 0x204   :  { %v4408_v51 = vpop.eup %3686  ;;  %3698 = vlog2.f32 %v596_v45  ;;  %v600_v24 = vadd.f32 1.0, %v599_v5  ;;  %vm603_vm15 = vcmp.lt.f32.partialorder %v602_v0, 0.0004427343  ;;  %v2925_v5 = vld [vmem:[%s5068_s3 + $0x78] sm:$0xff] }
 0x205   :  { %v3689_v56 = vpop.eup %3688  ;;  %3700 = vpow2.f32 %v556_v46  ;;  %v623_v59 = vadd.f32 1.0, %v4408_v51  ;;  %v610_v36 = vmul.f32 %v4401_v31, %v609_v48  ;;  %v626_v31 = vmul.f32 -0.5, %v4408_v51 }
 0x206   :  { %v3691_v1 = vpop.eup %3690  ;;  %v571_v50 = vmul.f32 0.6931472, %v3689_v56  ;;  %v601_v32 = vmul.f32 %v4403_v60, %v600_v24  ;;  %v629_v46 = vand.u32 2147483647, %v4408_v51  ;;  %v527_v56 = vmin.f32 %v4395_v20, 0.0  ;;  %v2921_v20 = vld [vmem:[%s5068_s3 + $0x58] sm:$0xff] }
 0x207   :  { %v562_v4 = vmul.f32 0.6931472, %v3691_v1  ;;  %3702 = vlog2.f32 %v623_v59  ;;  %v627_v45 = vadd.f32 1.0, %v626_v31  ;;  %v2942_v59 = vld [vmem:[%s5068_s3 + $0x80] sm:$0xff] }
 0x208   :  { %v577_v6 = vsel %vm4412_vm10, %v574_v58, %v571_v50  ;;  %vm630_vm0 = vcmp.lt.f32.partialorder %v629_v46, 0.0004427343  ;;  %3321 = vmatprep.mubr.msk.f32.mxu1 %vm390_vm1, %v2942_v59 }
 0x209   :  { %v3693_v10 = vpop.eup %3692  ;;  %v633_v12 = vsub.f32 %v521_v47, %v577_v6  ;;  %v568_v13 = vsel %vm567_vm11, %v565_v2, %v562_v4  ;;  %v628_v47 = vmul.f32 %v4408_v51, %v627_v45  ;;  %v2919_v51 = vld [vmem:[%s5068_s3 + $0x48] sm:$0xff]  ;;  %v666_v6 = vpop.permute.xlu1 %665 }
 0x20a   :  { %v3695_v16 = vpop.eup %3694  ;;  %v632_v18 = vsub.f32 %v520_v53, %v568_v13  ;;  %v589_v19 = vmul.f32 0.6931472, %v3693_v10  ;;  %v2923_v4 = vld [vmem:[%s5068_s3 + $0x68] sm:$0xff] }
 0x20b   :  { %v580_v22 = vmul.f32 0.6931472, %v3695_v16 }
 0x20c   :  { %v595_v25 = vsel %vm594_vm12, %v592_v15, %v589_v19  ;;  %v3508_v27 = vpack.c.bf16 %v633_v12, %v632_v18 }
 0x20d   :  { %v3697_v14 = vpop.eup %3696  ;;  %v635_v30 = vsub.f32 %v523_v55, %v595_v25  ;;  %v586_v17 = vsel %vm585_vm13, %v583_v23, %v580_v22  ;;  %v676_v9 = vpop.permute.xlu1 %675 }
 0x20e   :  { %v3699_v26 = vpop.eup %3698  ;;  %v634_v34 = vsub.f32 %v522_v7, %v586_v17  ;;  %v607_v28 = vmul.f32 0.6931472, %v3697_v14  ;;  %3509 = vmatprep.subr.bf16.mxu0 %v3508_v27  ;;  %v661_v7 = vpop.permute.xlu0 %660 }
 0x20f   :  { %v598_v33 = vmul.f32 0.6931472, %v3699_v26  ;;  %3511 = vmatpush3.bf16.msra.mxu0 %v3508_v27  ;;  %v3701_v37 = vpop.eup %3700 }
 0x210   :  { %v613_v39 = vsel %vm612_vm14, %v610_v36, %v607_v28  ;;  %v3512_v57 = vpack.c.bf16 %v635_v30, %v634_v34  ;;  %v614_v42 = vadd.f32 1.0, %v3701_v37  ;;  %v617_v60 = vmul.f32 -0.5, %v3701_v37 }
 0x211   :  { %v637_v35 = vsub.f32 %v525_v38, %v613_v39  ;;  %v604_v41 = vsel %vm603_vm15, %v601_v32, %v598_v33  ;;  %v3703_v44 = vpop.eup %3702  ;;  %v620_v53 = vand.u32 2147483647, %v3701_v37  ;;  %v686_v24 = vpop.permute.xlu1 %685 }
 0x212   :  { %v636_v43 = vsub.f32 %v524_v40, %v604_v41  ;;  %3513 = vmatprep.subr.bf16.mxu0 %v3512_v57  ;;  %3704 = vlog2.f32 %v614_v42  ;;  %v625_v11 = vmul.f32 0.6931472, %v3703_v44  ;;  %v618_v49 = vadd.f32 1.0, %v617_v60  ;;  %v671_v16 = vpop.permute.xlu0 %670 }
 0x213   :  { %3515 = vmatpush3.bf16.msra.mxu0 %v3512_v57  ;;  %vm621_vm2 = vcmp.lt.f32.partialorder %v620_v53, 0.0004427343 }
 0x214   :  { %v3516_v8 = vpack.c.bf16 %v637_v35, %v636_v43  ;;  %v631_v54 = vsel %vm630_vm0, %v628_v47, %v625_v11  ;;  %v619_v61 = vmul.f32 %v3701_v37, %v618_v49 }
 0x215   :  { %v639_v62 = vsub.f32 %v527_v56, %v631_v54  ;;  %v696_v40 = vpop.permute.xlu1 %695 }
 0x216   :  { %3517 = vmatprep.subr.bf16.mxu0 %v3516_v8  ;;  %v681_v34 = vpop.permute.xlu0 %680 }
 0x217   :  { %3519 = vmatpush3.bf16.msra.mxu0 %v3516_v8 }
 0x21a   :  { %v691_v60 = vpop.permute.xlu0 %690 }
 0x21c   :  { %v3705_v55 = vpop.eup %3704 }
 0x21d   :  { %v616_v58 = vmul.f32 0.6931472, %v3705_v55 }
 0x21f   :  { %v622_v1 = vsel %vm621_vm2, %v619_v61, %v616_v58 }
 0x220   :  { %v638_v50 = vsub.f32 %v526_v63, %v622_v1 }
 0x222   :  { %v3520_v2 = vpack.c.bf16 %v639_v62, %v638_v50 }
 0x224   :  { %3521 = vmatprep.subr.bf16.mxu0 %v3520_v2 }
 0x225   :  { %3523 = vmatpush3.bf16.msra.mxu0 %v3520_v2 }
 0x228   :  { %3294 = vmatmul.mubr.msk.f32.vlgmr.msra.gmra.mrb[8].mxu0 %vm390_vm1, %v2919_v51 }
 0x229   :  { %3296 = vmatprep.mubr.msk.f32.mxu0 %vm390_vm1, %v2920_v3 }
 0x22c   :  { %3297 = vmatmul.mubr.msk.f32.gmra.mrb[10].mxu0 %vm390_vm1, %v2921_v20 }
 0x22d   :  { %3299 = vmatprep.mubr.msk.f32.mxu0 %vm390_vm1, %v2922_v29 }
 0x230   :  { %3300 = vmatmul.mubr.msk.f32.gmra.mrb[12].mxu0 %vm390_vm1, %v2923_v4 }
 0x231   :  { %3302 = vmatprep.mubr.msk.f32.mxu0 %vm390_vm1, %v2924_v52 }
 0x234   :  { %3303 = vmatmul.mubr.msk.f32.gmra.mrb[14].mxu0 %vm390_vm1, %v2925_v5 }
 0x2fb   :  { %v3295_v10 = vpop.f32.mrb[8].mxu0 }
 0x2fc   :  { %v4465_v12 = vadd.f32 %v3295_v10, %v666_v6  ;;  %v788_v13 = vpop.f32.mrb[9].mxu0 }
 0x2fd   :  { %v4467_v15 = vadd.f32 %v788_v13, %v661_v7 }
 0x2fe   :  { %v836_v18 = vand.u32 2147483647, %v4465_v12 }
 0x2ff   :  { %v835_v19 = vand.u32 2147483647, %v4467_v15  ;;  %v3298_v48 = vpop.f32.mrb[10].mxu0 }
 0x300   :  { %v844_v21 = vsub.f32 0.0, %v836_v18  ;;  %v4471_v22 = vadd.f32 %v3298_v48, %v676_v9  ;;  %v798_v23 = vpop.f32.mrb[11].mxu0  ;;  %v828_v9 = vmin.f32 %v4465_v12, 0.0 }
 0x301   :  { %v843_v25 = vsub.f32 0.0, %v835_v19  ;;  %v4473_v0 = vadd.f32 %v798_v23, %v671_v16  ;;  %v827_v16 = vmin.f32 %v4467_v15, 0.0 }
 0x302   :  { %v853_v27 = vmul.f32 1.442695, %v844_v21  ;;  %v838_v14 = vand.u32 2147483647, %v4471_v22  ;;  %v830_v19 = vmin.f32 %v4471_v22, 0.0 }
 0x303   :  { %v851_v30 = vmul.f32 1.442695, %v843_v25  ;;  %v837_v17 = vand.u32 2147483647, %v4473_v0  ;;  %v3301_v26 = vpop.f32.mrb[12].mxu0 }
 0x304   :  { %3706 = vpow2.f32 %v853_v27  ;;  %v846_v28 = vsub.f32 0.0, %v838_v14  ;;  %v4477_v36 = vadd.f32 %v3301_v26, %v686_v24  ;;  %v808_v38 = vpop.f32.mrb[13].mxu0 }
 0x305   :  { %3708 = vpow2.f32 %v851_v30  ;;  %v845_v33 = vsub.f32 0.0, %v837_v17  ;;  %v4479_v32 = vadd.f32 %v808_v38, %v681_v34 }
 0x306   :  { %v857_v37 = vmul.f32 1.442695, %v846_v28  ;;  %v840_v39 = vand.u32 2147483647, %v4477_v36  ;;  %v829_v28 = vmin.f32 %v4473_v0, 0.0 }
 0x307   :  { %v855_v57 = vmul.f32 1.442695, %v845_v33  ;;  %v839_v35 = vand.u32 2147483647, %v4479_v32  ;;  %v3304_v41 = vpop.f32.mrb[14].mxu0 }
 0x308   :  { %3710 = vpow2.f32 %v857_v37  ;;  %v848_v42 = vsub.f32 0.0, %v840_v39  ;;  %v4483_v43 = vadd.f32 %v3304_v41, %v696_v40  ;;  %v818_v31 = vpop.f32.mrb[15].mxu0 }
 0x309   :  { %3712 = vpow2.f32 %v855_v57  ;;  %v847_v8 = vsub.f32 0.0, %v839_v35  ;;  %v4486_v47 = vadd.f32 %v818_v31, %v691_v60 }
 0x30a   :  { %v861_v44 = vmul.f32 1.442695, %v848_v42  ;;  %v842_v45 = vand.u32 2147483647, %v4483_v43 }
 0x30b   :  { %v859_v46 = vmul.f32 1.442695, %v847_v8  ;;  %v841_v58 = vand.u32 2147483647, %v4486_v47 }
 0x30c   :  { %3714 = vpow2.f32 %v861_v44  ;;  %v850_v11 = vsub.f32 0.0, %v842_v45 }
 0x30d   :  { %3716 = vpow2.f32 %v859_v46  ;;  %v849_v51 = vsub.f32 0.0, %v841_v58 }
 0x30e   :  { %v3707_v49 = vpop.eup %3706  ;;  %v865_v53 = vmul.f32 1.442695, %v850_v11 }
 0x30f   :  { %v3709_v54 = vpop.eup %3708  ;;  %v876_v55 = vadd.f32 1.0, %v3707_v49  ;;  %v879_v63 = vmul.f32 -0.5, %v3707_v49  ;;  %v882_v4 = vand.u32 2147483647, %v3707_v49  ;;  %v863_v7 = vmul.f32 1.442695, %v849_v51 }
 0x310   :  { %v867_v56 = vadd.f32 1.0, %v3709_v54  ;;  %3718 = vpow2.f32 %v865_v53  ;;  %v870_v50 = vmul.f32 -0.5, %v3709_v54  ;;  %v873_v18 = vand.u32 2147483647, %v3709_v54 }
 0x311   :  { %3720 = vlog2.f32 %v876_v55  ;;  %v880_v29 = vadd.f32 1.0, %v879_v63  ;;  %vm4500_vm3 = vcmp.lt.f32.partialorder %v882_v4, 0.0004427343 }
 0x312   :  { %v3711_v61 = vpop.eup %3710  ;;  %3722 = vlog2.f32 %v867_v56  ;;  %v871_v59 = vadd.f32 1.0, %v870_v50  ;;  %vm874_vm4 = vcmp.lt.f32.partialorder %v873_v18, 0.0004427343 }
 0x313   :  { %v3713_v62 = vpop.eup %3712  ;;  %v894_v1 = vadd.f32 1.0, %v3711_v61  ;;  %v897_v52 = vmul.f32 -0.5, %v3711_v61  ;;  %v881_v21 = vmul.f32 %v3707_v49, %v880_v29  ;;  %v900_v25 = vand.u32 2147483647, %v3711_v61 }
 0x314   :  { %v885_v2 = vadd.f32 1.0, %v3713_v62  ;;  %v888_v10 = vmul.f32 -0.5, %v3713_v62  ;;  %v872_v14 = vmul.f32 %v3709_v54, %v871_v59  ;;  %v891_v38 = vand.u32 2147483647, %v3713_v62 }
 0x315   :  { %3724 = vlog2.f32 %v894_v1  ;;  %v898_v24 = vadd.f32 1.0, %v897_v52  ;;  %vm901_vm5 = vcmp.lt.f32.partialorder %v900_v25, 0.0004427343  ;;  %v833_v25 = vmin.f32 %v4486_v47, 0.0  ;;  %v2946_v47 = vld [vmem:[%s5068_s3 + $0xa0] sm:$0xff] }
 0x316   :  { %v4489_v3 = vpop.eup %3714  ;;  %3726 = vlog2.f32 %v885_v2  ;;  %v889_v15 = vadd.f32 1.0, %v888_v10  ;;  %vm892_vm6 = vcmp.lt.f32.partialorder %v891_v38, 0.0004427343  ;;  %v831_v2 = vmin.f32 %v4479_v32, 0.0 }
 0x317   :  { %v4491_v20 = vpop.eup %3716  ;;  %v912_v5 = vadd.f32 1.0, %v4489_v3  ;;  %v915_v30 = vmul.f32 -0.5, %v4489_v3  ;;  %v899_v40 = vmul.f32 %v3711_v61, %v898_v24  ;;  %v918_v31 = vand.u32 2147483647, %v4489_v3 }
 0x318   :  { %v903_v6 = vadd.f32 1.0, %v4491_v20  ;;  %v906_v26 = vmul.f32 -0.5, %v4491_v20  ;;  %v890_v44 = vmul.f32 %v3713_v62, %v889_v15  ;;  %v909_v0 = vand.u32 2147483647, %v4491_v20  ;;  %v2948_v15 = vld [vmem:[%s5068_s3 + $0xb0] sm:$0xff] }
 0x319   :  { %3728 = vlog2.f32 %v912_v5  ;;  %v916_v42 = vadd.f32 1.0, %v915_v30  ;;  %v832_v61 = vmin.f32 %v4477_v36, 0.0  ;;  %vm919_vm7 = vcmp.lt.f32.partialorder %v918_v31, 0.0004427343  ;;  %v2944_v30 = vld [vmem:[%s5068_s3 + $0x90] sm:$0xff] }
 0x31a   :  { %v4496_v13 = vpop.eup %3718  ;;  %3730 = vlog2.f32 %v903_v6  ;;  %v907_v45 = vadd.f32 1.0, %v906_v26  ;;  %vm910_vm8 = vcmp.lt.f32.partialorder %v909_v0, 0.0004427343  ;;  %v2949_v26 = vld [vmem:[%s5068_s3 + $0xb8] sm:$0xff] }
 0x31b   :  { %v3721_v48 = vpop.eup %3720  ;;  %3732 = vpow2.f32 %v863_v7  ;;  %v930_v22 = vadd.f32 1.0, %v4496_v13  ;;  %v917_v58 = vmul.f32 %v4489_v3, %v916_v42  ;;  %v933_v3 = vmul.f32 -0.5, %v4496_v13 }
 0x31c   :  { %v3723_v27 = vpop.eup %3722  ;;  %v878_v12 = vmul.f32 0.6931472, %v3721_v48  ;;  %v908_v63 = vmul.f32 %v4491_v20, %v907_v45  ;;  %v936_v7 = vand.u32 2147483647, %v4496_v13  ;;  %v834_v48 = vmin.f32 %v4483_v43, 0.0  ;;  %v2945_v43 = vld [vmem:[%s5068_s3 + $0x98] sm:$0xff] }
 0x31d   :  { %v869_v17 = vmul.f32 0.6931472, %v3723_v27  ;;  %3734 = vlog2.f32 %v930_v22  ;;  %v934_v6 = vadd.f32 1.0, %v933_v3  ;;  %v2966_v22 = vld [vmem:[%s5068_s3 + $0xc0] sm:$0xff] }
 0x31e   :  { %v884_v34 = vsel %vm4500_vm3, %v881_v21, %v878_v12  ;;  %vm937_vm9 = vcmp.lt.f32.partialorder %v936_v7, 0.0004427343  ;;  %3349 = vmatprep.mubr.msk.f32.mxu0 %vm390_vm1, %v2966_v22 }
 0x31f   :  { %v3725_v33 = vpop.eup %3724  ;;  %v940_v37 = vsub.f32 %v828_v9, %v884_v34  ;;  %v875_v39 = vsel %vm874_vm4, %v872_v14, %v869_v17  ;;  %v935_v9 = vmul.f32 %v4496_v13, %v934_v6  ;;  %v2943_v13 = vld [vmem:[%s5068_s3 + $0x88] sm:$0xff]  ;;  %v973_v34 = vpop.permute.xlu1 %972 }
 0x320   :  { %v3727_v57 = vpop.eup %3726  ;;  %v939_v35 = vsub.f32 %v827_v16, %v875_v39  ;;  %v896_v41 = vmul.f32 0.6931472, %v3725_v33  ;;  %v2947_v17 = vld [vmem:[%s5068_s3 + $0xa8] sm:$0xff] }
 0x321   :  { %v887_v8 = vmul.f32 0.6931472, %v3727_v57 }
 0x322   :  { %v902_v60 = vsel %vm901_vm5, %v899_v40, %v896_v41  ;;  %v3524_v46 = vpack.c.bf16 %v940_v37, %v939_v35 }
 0x323   :  { %v3729_v11 = vpop.eup %3728  ;;  %v942_v49 = vsub.f32 %v830_v19, %v902_v60  ;;  %v893_v53 = vsel %vm892_vm6, %v890_v44, %v887_v8  ;;  %v983_v38 = vpop.permute.xlu1 %982 }
 0x324   :  { %v3731_v54 = vpop.eup %3730  ;;  %v941_v55 = vsub.f32 %v829_v28, %v893_v53  ;;  %v914_v56 = vmul.f32 0.6931472, %v3729_v11  ;;  %3525 = vmatprep.subr.bf16.mxu1 %v3524_v46  ;;  %v968_v28 = vpop.permute.xlu0 %967 }
 0x325   :  { %v905_v62 = vmul.f32 0.6931472, %v3731_v54  ;;  %3527 = vmatpush3.bf16.msra.mxu1 %v3524_v46  ;;  %v3733_v1 = vpop.eup %3732 }
 0x326   :  { %v920_v50 = vsel %vm919_vm7, %v917_v58, %v914_v56  ;;  %v3528_v51 = vpack.c.bf16 %v942_v49, %v941_v55  ;;  %v921_v52 = vadd.f32 1.0, %v3733_v1  ;;  %v924_v20 = vmul.f32 -0.5, %v3733_v1 }
 0x327   :  { %v944_v29 = vsub.f32 %v832_v61, %v920_v50  ;;  %v911_v4 = vsel %vm910_vm8, %v908_v63, %v905_v62  ;;  %v3735_v59 = vpop.eup %3734  ;;  %v927_v16 = vand.u32 2147483647, %v3733_v1  ;;  %v993_v45 = vpop.permute.xlu1 %992 }
 0x328   :  { %v943_v5 = vsub.f32 %v831_v2, %v911_v4  ;;  %3529 = vmatprep.subr.bf16.mxu1 %v3528_v51  ;;  %3736 = vlog2.f32 %v921_v52  ;;  %v932_v32 = vmul.f32 0.6931472, %v3735_v59  ;;  %v925_v10 = vadd.f32 1.0, %v924_v20  ;;  %v978_v57 = vpop.permute.xlu0 %977 }
 0x329   :  { %3531 = vmatpush3.bf16.msra.mxu1 %v3528_v51  ;;  %vm928_vm10 = vcmp.lt.f32.partialorder %v927_v16, 0.0004427343 }
 0x32a   :  { %v3532_v36 = vpack.c.bf16 %v944_v29, %v943_v5  ;;  %v938_v18 = vsel %vm937_vm9, %v935_v9, %v932_v32  ;;  %v926_v23 = vmul.f32 %v3733_v1, %v925_v10 }
 0x32b   :  { %v946_v24 = vsub.f32 %v834_v48, %v938_v18  ;;  %v1003_v2 = vpop.permute.xlu1 %1002 }
 0x32c   :  { %3533 = vmatprep.subr.bf16.mxu1 %v3532_v36  ;;  %v988_v55 = vpop.permute.xlu0 %987 }
 0x32d   :  { %3535 = vmatpush3.bf16.msra.mxu1 %v3532_v36 }
 0x330   :  { %v998_v20 = vpop.permute.xlu0 %997 }
 0x332   :  { %v3737_v19 = vpop.eup %3736 }
 0x333   :  { %v923_v21 = vmul.f32 0.6931472, %v3737_v19 }
 0x335   :  { %v929_v27 = vsel %vm928_vm10, %v926_v23, %v923_v21 }
 0x336   :  { %v945_v12 = vsub.f32 %v833_v25, %v929_v27 }
 0x338   :  { %v3536_v14 = vpack.c.bf16 %v946_v24, %v945_v12 }
 0x33a   :  { %3537 = vmatprep.subr.bf16.mxu1 %v3536_v14 }
 0x33b   :  { %3539 = vmatpush3.bf16.msra.mxu1 %v3536_v14 }
 0x33e   :  { %3322 = vmatmul.mubr.msk.f32.vlgmr.msra.gmra.mrb[8].mxu1 %vm390_vm1, %v2943_v13 }
 0x33f   :  { %3324 = vmatprep.mubr.msk.f32.mxu1 %vm390_vm1, %v2944_v30 }
 0x342   :  { %3325 = vmatmul.mubr.msk.f32.gmra.mrb[10].mxu1 %vm390_vm1, %v2945_v43 }
 0x343   :  { %3327 = vmatprep.mubr.msk.f32.mxu1 %vm390_vm1, %v2946_v47 }
 0x346   :  { %3328 = vmatmul.mubr.msk.f32.gmra.mrb[12].mxu1 %vm390_vm1, %v2947_v17 }
 0x347   :  { %3330 = vmatprep.mubr.msk.f32.mxu1 %vm390_vm1, %v2948_v15 }
 0x34a   :  { %3331 = vmatmul.mubr.msk.f32.gmra.mrb[14].mxu1 %vm390_vm1, %v2949_v26 }
 0x411   :  { %v3323_v33 = vpop.f32.mrb[8].mxu1 }
 0x412   :  { %v4553_v37 = vadd.f32 %v3323_v33, %v973_v34  ;;  %v1095_v39 = vpop.f32.mrb[9].mxu1 }
 0x413   :  { %v4555_v40 = vadd.f32 %v1095_v39, %v968_v28 }
 0x414   :  { %v1143_v35 = vand.u32 2147483647, %v4553_v37 }
 0x415   :  { %v1142_v41 = vand.u32 2147483647, %v4555_v40  ;;  %v3326_v42 = vpop.f32.mrb[10].mxu1 }
 0x416   :  { %v1151_v31 = vsub.f32 0.0, %v1143_v35  ;;  %v4559_v8 = vadd.f32 %v3326_v42, %v983_v38  ;;  %v1105_v44 = vpop.f32.mrb[11].mxu1  ;;  %v1135_v38 = vmin.f32 %v4553_v37, 0.0 }
 0x417   :  { %v1150_v60 = vsub.f32 0.0, %v1142_v41  ;;  %v4561_v0 = vadd.f32 %v1105_v44, %v978_v57  ;;  %v1134_v57 = vmin.f32 %v4555_v40, 0.0 }
 0x418   :  { %v1160_v46 = vmul.f32 1.442695, %v1151_v31  ;;  %v1145_v11 = vand.u32 2147483647, %v4559_v8  ;;  %v1137_v41 = vmin.f32 %v4559_v8, 0.0 }
 0x419   :  { %v1158_v49 = vmul.f32 1.442695, %v1150_v60  ;;  %v1144_v53 = vand.u32 2147483647, %v4561_v0  ;;  %v3329_v54 = vpop.f32.mrb[12].mxu1 }
 0x41a   :  { %3738 = vpow2.f32 %v1160_v46  ;;  %v1153_v56 = vsub.f32 0.0, %v1145_v11  ;;  %v4565_v58 = vadd.f32 %v3329_v54, %v993_v45  ;;  %v1115_v61 = vpop.f32.mrb[13].mxu1 }
 0x41b   :  { %3740 = vpow2.f32 %v1158_v49  ;;  %v1152_v62 = vsub.f32 0.0, %v1144_v53  ;;  %v4567_v63 = vadd.f32 %v1115_v61, %v988_v55 }
 0x41c   :  { %v1164_v1 = vmul.f32 1.442695, %v1153_v56  ;;  %v1147_v50 = vand.u32 2147483647, %v4565_v58  ;;  %v1136_v56 = vmin.f32 %v4561_v0, 0.0 }
 0x41d   :  { %v1162_v51 = vmul.f32 1.442695, %v1152_v62  ;;  %v1146_v29 = vand.u32 2147483647, %v4567_v63  ;;  %v3332_v4 = vpop.f32.mrb[14].mxu1 }
 0x41e   :  { %3742 = vpow2.f32 %v1164_v1  ;;  %v1155_v52 = vsub.f32 0.0, %v1147_v50  ;;  %v4571_v5 = vadd.f32 %v3332_v4, %v1003_v2  ;;  %v1125_v3 = vpop.f32.mrb[15].mxu1 }
 0x41f   :  { %3744 = vpow2.f32 %v1162_v51  ;;  %v1154_v36 = vsub.f32 0.0, %v1146_v29  ;;  %v4574_v9 = vadd.f32 %v1125_v3, %v998_v20 }
 0x420   :  { %v1168_v59 = vmul.f32 1.442695, %v1155_v52  ;;  %v1149_v6 = vand.u32 2147483647, %v4571_v5 }
 0x421   :  { %v1166_v7 = vmul.f32 1.442695, %v1154_v36  ;;  %v1148_v21 = vand.u32 2147483647, %v4574_v9 }
 0x422   :  { %3746 = vpow2.f32 %v1168_v59  ;;  %v1157_v32 = vsub.f32 0.0, %v1149_v6 }
 0x423   :  { %3748 = vpow2.f32 %v1166_v7  ;;  %v1156_v13 = vsub.f32 0.0, %v1148_v21 }
 0x424   :  { %v3739_v10 = vpop.eup %3738  ;;  %v1172_v16 = vmul.f32 1.442695, %v1157_v32 }
 0x425   :  { %v3741_v18 = vpop.eup %3740  ;;  %v1183_v19 = vadd.f32 1.0, %v3739_v10  ;;  %v1186_v25 = vmul.f32 -0.5, %v3739_v10  ;;  %v1189_v17 = vand.u32 2147483647, %v3739_v10  ;;  %v1170_v28 = vmul.f32 1.442695, %v1156_v13 }
 0x426   :  { %v1174_v48 = vadd.f32 1.0, %v3741_v18  ;;  %3750 = vpow2.f32 %v1172_v16  ;;  %v1177_v12 = vmul.f32 -0.5, %v3741_v18  ;;  %v1180_v35 = vand.u32 2147483647, %v3741_v18 }
 0x427   :  { %3752 = vlog2.f32 %v1183_v19  ;;  %v1187_v47 = vadd.f32 1.0, %v1186_v25  ;;  %vm4588_vm11 = vcmp.lt.f32.partialorder %v1189_v17, 0.0004427343 }
 0x428   :  { %v3743_v23 = vpop.eup %3742  ;;  %3754 = vlog2.f32 %v1174_v48  ;;  %v1178_v22 = vadd.f32 1.0, %v1177_v12  ;;  %vm1181_vm12 = vcmp.lt.f32.partialorder %v1180_v35, 0.0004427343 }
 0x429   :  { %v3745_v24 = vpop.eup %3744  ;;  %v1201_v27 = vadd.f32 1.0, %v3743_v23  ;;  %v1204_v15 = vmul.f32 -0.5, %v3743_v23  ;;  %v1188_v31 = vmul.f32 %v3739_v10, %v1187_v47  ;;  %v1207_v60 = vand.u32 2147483647, %v3743_v23 }
 0x42a   :  { %v1192_v14 = vadd.f32 1.0, %v3745_v24  ;;  %v1195_v33 = vmul.f32 -0.5, %v3745_v24  ;;  %v1179_v11 = vmul.f32 %v3741_v18, %v1178_v22  ;;  %v1198_v61 = vand.u32 2147483647, %v3745_v24 }
 0x42b   :  { %3756 = vlog2.f32 %v1201_v27  ;;  %v1205_v45 = vadd.f32 1.0, %v1204_v15  ;;  %vm1208_vm13 = vcmp.lt.f32.partialorder %v1207_v60, 0.0004427343  ;;  %v1140_v60 = vmin.f32 %v4574_v9, 0.0  ;;  %v2970_v9 = vld [vmem:[%s5068_s3 + $0xe0] sm:$0xff] }
 0x42c   :  { %v4577_v30 = vpop.eup %3746  ;;  %3758 = vlog2.f32 %v1192_v14  ;;  %v1196_v40 = vadd.f32 1.0, %v1195_v33  ;;  %vm1199_vm14 = vcmp.lt.f32.partialorder %v1198_v61, 0.0004427343  ;;  %v1138_v14 = vmin.f32 %v4567_v63, 0.0 }
 0x42d   :  { %v4579_v43 = vpop.eup %3748  ;;  %v1219_v26 = vadd.f32 1.0, %v4577_v30  ;;  %v1222_v49 = vmul.f32 -0.5, %v4577_v30  ;;  %v1206_v2 = vmul.f32 %v3743_v23, %v1205_v45  ;;  %v1225_v3 = vand.u32 2147483647, %v4577_v30 }
 0x42e   :  { %v1210_v34 = vadd.f32 1.0, %v4579_v43  ;;  %v1213_v54 = vmul.f32 -0.5, %v4579_v43  ;;  %v1197_v59 = vmul.f32 %v3745_v24, %v1196_v40  ;;  %v1216_v0 = vand.u32 2147483647, %v4579_v43  ;;  %v2972_v40 = vld [vmem:[%s5068_s3 + $0xf0] sm:$0xff] }
 0x42f   :  { %3760 = vlog2.f32 %v1219_v26  ;;  %v1223_v52 = vadd.f32 1.0, %v1222_v49  ;;  %v1139_v23 = vmin.f32 %v4565_v58, 0.0  ;;  %vm1226_vm15 = vcmp.lt.f32.partialorder %v1225_v3, 0.0004427343  ;;  %v2968_v49 = vld [vmem:[%s5068_s3 + $0xd0] sm:$0xff] }
 0x430   :  { %v4584_v39 = vpop.eup %3750  ;;  %3762 = vlog2.f32 %v1210_v34  ;;  %v1214_v6 = vadd.f32 1.0, %v1213_v54  ;;  %vm1217_vm0 = vcmp.lt.f32.partialorder %v1216_v0, 0.0004427343  ;;  %v2973_v54 = vld [vmem:[%s5068_s3 + $0xf8] sm:$0xff] }
 0x431   :  { %v3753_v42 = vpop.eup %3752  ;;  %3764 = vpow2.f32 %v1170_v28  ;;  %v1237_v8 = vadd.f32 1.0, %v4584_v39  ;;  %v1224_v21 = vmul.f32 %v4577_v30, %v1223_v52  ;;  %v1240_v30 = vmul.f32 -0.5, %v4584_v39 }
 0x432   :  { %v3755_v46 = vpop.eup %3754  ;;  %v1185_v37 = vmul.f32 0.6931472, %v3753_v42  ;;  %v1215_v25 = vmul.f32 %v4579_v43, %v1214_v6  ;;  %v1243_v28 = vand.u32 2147483647, %v4584_v39  ;;  %v1141_v42 = vmin.f32 %v4571_v5, 0.0  ;;  %v2969_v5 = vld [vmem:[%s5068_s3 + $0xd8] sm:$0xff] }
 0x433   :  { %v1176_v53 = vmul.f32 0.6931472, %v3755_v46  ;;  %3766 = vlog2.f32 %v1237_v8  ;;  %v1241_v34 = vadd.f32 1.0, %v1240_v30  ;;  %v2990_v8 = vld [vmem:[%s5068_s3 + $0x100] sm:$0xff] }
 0x434   :  { %v1191_v55 = vsel %vm4588_vm11, %v1188_v31, %v1185_v37  ;;  %vm1244_vm2 = vcmp.lt.f32.partialorder %v1243_v28, 0.0004427343  ;;  %3377 = vmatprep.mubr.msk.f32.mxu1 %vm390_vm1, %v2990_v8 }
 0x435   :  { %v3757_v62 = vpop.eup %3756  ;;  %v1247_v1 = vsub.f32 %v1135_v38, %v1191_v55  ;;  %v1182_v50 = vsel %vm1181_vm12, %v1179_v11, %v1176_v53  ;;  %v1242_v38 = vmul.f32 %v4584_v39, %v1241_v34  ;;  %v2967_v39 = vld [vmem:[%s5068_s3 + $0xc8] sm:$0xff]  ;;  %v1280_v55 = vpop.permute.xlu1 %1279 }
 0x436   :  { %v3759_v51 = vpop.eup %3758  ;;  %v1246_v29 = vsub.f32 %v1134_v57, %v1182_v50  ;;  %v1203_v4 = vmul.f32 0.6931472, %v3757_v62  ;;  %v2971_v53 = vld [vmem:[%s5068_s3 + $0xe8] sm:$0xff] }
 0x437   :  { %v1194_v36 = vmul.f32 0.6931472, %v3759_v51 }
 0x438   :  { %v1209_v20 = vsel %vm1208_vm13, %v1206_v2, %v1203_v4  ;;  %v3540_v7 = vpack.c.bf16 %v1247_v1, %v1246_v29 }
 0x439   :  { %v3761_v32 = vpop.eup %3760  ;;  %v1249_v10 = vsub.f32 %v1137_v41, %v1209_v20  ;;  %v1200_v16 = vsel %vm1199_vm14, %v1197_v59, %v1194_v36  ;;  %v1290_v61 = vpop.permute.xlu1 %1289 }
 0x43a   :  { %v3763_v18 = vpop.eup %3762  ;;  %v1248_v19 = vsub.f32 %v1136_v56, %v1200_v16  ;;  %v1221_v48 = vmul.f32 0.6931472, %v3761_v32  ;;  %3541 = vmatprep.subr.bf16.mxu0 %v3540_v7  ;;  %v1275_v56 = vpop.permute.xlu0 %1274 }
 0x43b   :  { %v1212_v24 = vmul.f32 0.6931472, %v3763_v18  ;;  %3543 = vmatpush3.bf16.msra.mxu0 %v3540_v7  ;;  %v3765_v27 = vpop.eup %3764 }
 0x43c   :  { %v1227_v12 = vsel %vm1226_vm15, %v1224_v21, %v1221_v48  ;;  %v3544_v13 = vpack.c.bf16 %v1249_v10, %v1248_v19  ;;  %v1228_v15 = vadd.f32 1.0, %v3765_v27  ;;  %v1231_v43 = vmul.f32 -0.5, %v3765_v27 }
 0x43d   :  { %v1251_v47 = vsub.f32 %v1139_v23, %v1227_v12  ;;  %v1218_v17 = vsel %vm1217_vm0, %v1215_v25, %v1212_v24  ;;  %v3767_v22 = vpop.eup %3766  ;;  %v1234_v57 = vand.u32 2147483647, %v3765_v27  ;;  %v1300_v6 = vpop.permute.xlu1 %1299 }
 0x43e   :  { %v1250_v26 = vsub.f32 %v1138_v14, %v1218_v17  ;;  %3545 = vmatprep.subr.bf16.mxu0 %v3544_v13  ;;  %3768 = vlog2.f32 %v1228_v15  ;;  %v1239_v63 = vmul.f32 0.6931472, %v3767_v22  ;;  %v1232_v33 = vadd.f32 1.0, %v1231_v43  ;;  %v1285_v51 = vpop.permute.xlu0 %1284 }
 0x43f   :  { %3547 = vmatpush3.bf16.msra.mxu0 %v3544_v13  ;;  %vm1235_vm3 = vcmp.lt.f32.partialorder %v1234_v57, 0.0004427343 }
 0x440   :  { %v3548_v58 = vpack.c.bf16 %v1251_v47, %v1250_v26  ;;  %v1245_v35 = vsel %vm1244_vm2, %v1242_v38, %v1239_v63  ;;  %v1233_v44 = vmul.f32 %v3765_v27, %v1232_v33 }
 0x441   :  { %v1253_v45 = vsub.f32 %v1141_v42, %v1245_v35  ;;  %v1310_v14 = vpop.permute.xlu1 %1309 }
 0x442   :  { %3549 = vmatprep.subr.bf16.mxu0 %v3548_v58  ;;  %v1295_v19 = vpop.permute.xlu0 %1294 }
 0x443   :  { %3551 = vmatpush3.bf16.msra.mxu0 %v3548_v58 }
 0x446   :  { %v1305_v43 = vpop.permute.xlu0 %1304 }
 0x448   :  { %v3769_v41 = vpop.eup %3768 }
 0x449   :  { %v1230_v31 = vmul.f32 0.6931472, %v3769_v41 }
 0x44b   :  { %v1236_v46 = vsel %vm1235_vm3, %v1233_v44, %v1230_v31 }
 0x44c   :  { %v1252_v37 = vsub.f32 %v1140_v60, %v1236_v46 }
 0x44e   :  { %v3552_v11 = vpack.c.bf16 %v1253_v45, %v1252_v37 }
 0x450   :  { %3553 = vmatprep.subr.bf16.mxu0 %v3552_v11 }
 0x451   :  { %3555 = vmatpush3.bf16.msra.mxu0 %v3552_v11 }
 0x454   :  { %3350 = vmatmul.mubr.msk.f32.vlgmr.msra.gmra.mrb[16].mxu0 %vm390_vm1, %v2967_v39 }
 0x455   :  { %3352 = vmatprep.mubr.msk.f32.mxu0 %vm390_vm1, %v2968_v49 }
 0x458   :  { %3353 = vmatmul.mubr.msk.f32.gmra.mrb[18].mxu0 %vm390_vm1, %v2969_v5 }
 0x459   :  { %3355 = vmatprep.mubr.msk.f32.mxu0 %vm390_vm1, %v2970_v9 }
 0x45c   :  { %3356 = vmatmul.mubr.msk.f32.gmra.mrb[20].mxu0 %vm390_vm1, %v2971_v53 }
 0x45d   :  { %3358 = vmatprep.mubr.msk.f32.mxu0 %vm390_vm1, %v2972_v40 }
 0x460   :  { %3359 = vmatmul.mubr.msk.f32.gmra.mrb[22].mxu0 %vm390_vm1, %v2973_v54 }
 0x527   :  { %v3351_v62 = vpop.f32.mrb[16].mxu0 }
 0x528   :  { %v4641_v1 = vadd.f32 %v3351_v62, %v1280_v55  ;;  %v1402_v50 = vpop.f32.mrb[17].mxu0 }
 0x529   :  { %v4643_v2 = vadd.f32 %v1402_v50, %v1275_v56 }
 0x52a   :  { %v1450_v29 = vand.u32 2147483647, %v4641_v1 }
 0x52b   :  { %v1449_v4 = vand.u32 2147483647, %v4643_v2  ;;  %v3354_v52 = vpop.f32.mrb[18].mxu0 }
 0x52c   :  { %v1458_v3 = vsub.f32 0.0, %v1450_v29  ;;  %v4647_v36 = vadd.f32 %v3354_v52, %v1290_v61  ;;  %v1412_v59 = vpop.f32.mrb[19].mxu0  ;;  %v1442_v61 = vmin.f32 %v4641_v1, 0.0 }
 0x52d   :  { %v1457_v20 = vsub.f32 0.0, %v1449_v4  ;;  %v4649_v0 = vadd.f32 %v1412_v59, %v1285_v51  ;;  %v1441_v51 = vmin.f32 %v4643_v2, 0.0 }
 0x52e   :  { %v1467_v7 = vmul.f32 1.442695, %v1458_v3  ;;  %v1452_v32 = vand.u32 2147483647, %v4647_v36  ;;  %v1444_v4 = vmin.f32 %v4647_v36, 0.0 }
 0x52f   :  { %v1465_v10 = vmul.f32 1.442695, %v1457_v20  ;;  %v1451_v16 = vand.u32 2147483647, %v4649_v0  ;;  %v3357_v18 = vpop.f32.mrb[20].mxu0 }
 0x530   :  { %3770 = vpow2.f32 %v1467_v7  ;;  %v1460_v48 = vsub.f32 0.0, %v1452_v32  ;;  %v4653_v21 = vadd.f32 %v3357_v18, %v1300_v6  ;;  %v1422_v23 = vpop.f32.mrb[21].mxu0 }
 0x531   :  { %3772 = vpow2.f32 %v1465_v10  ;;  %v1459_v24 = vsub.f32 0.0, %v1451_v16  ;;  %v4655_v25 = vadd.f32 %v1422_v23, %v1295_v19 }
 0x532   :  { %v1471_v27 = vmul.f32 1.442695, %v1460_v48  ;;  %v1454_v12 = vand.u32 2147483647, %v4653_v21  ;;  %v1443_v48 = vmin.f32 %v4649_v0, 0.0 }
 0x533   :  { %v1469_v13 = vmul.f32 1.442695, %v1459_v24  ;;  %v1453_v47 = vand.u32 2147483647, %v4655_v25  ;;  %v3360_v17 = vpop.f32.mrb[22].mxu0 }
 0x534   :  { %3774 = vpow2.f32 %v1471_v27  ;;  %v1462_v15 = vsub.f32 0.0, %v1454_v12  ;;  %v4659_v26 = vadd.f32 %v3360_v17, %v1310_v14  ;;  %v1432_v30 = vpop.f32.mrb[23].mxu0 }
 0x535   :  { %3776 = vpow2.f32 %v1469_v13  ;;  %v1461_v58 = vsub.f32 0.0, %v1453_v47  ;;  %v4662_v38 = vadd.f32 %v1432_v30, %v1305_v43 }
 0x536   :  { %v1475_v22 = vmul.f32 1.442695, %v1462_v15  ;;  %v1456_v34 = vand.u32 2147483647, %v4659_v26 }
 0x537   :  { %v1473_v28 = vmul.f32 1.442695, %v1461_v58  ;;  %v1455_v31 = vand.u32 2147483647, %v4662_v38 }
 0x538   :  { %3778 = vpow2.f32 %v1475_v22  ;;  %v1464_v63 = vsub.f32 0.0, %v1456_v34 }
 0x539   :  { %3780 = vpow2.f32 %v1473_v28  ;;  %v1463_v39 = vsub.f32 0.0, %v1455_v31 }
 0x53a   :  { %v3771_v33 = vpop.eup %3770  ;;  %v1479_v57 = vmul.f32 1.442695, %v1464_v63 }
 0x53b   :  { %v3773_v35 = vpop.eup %3772  ;;  %v1490_v41 = vadd.f32 1.0, %v3771_v33  ;;  %v1493_v60 = vmul.f32 -0.5, %v3771_v33  ;;  %v1496_v53 = vand.u32 2147483647, %v3771_v33  ;;  %v1477_v56 = vmul.f32 1.442695, %v1463_v39 }
 0x53c   :  { %v1481_v42 = vadd.f32 1.0, %v3773_v35  ;;  %3782 = vpow2.f32 %v1479_v57  ;;  %v1484_v37 = vmul.f32 -0.5, %v3773_v35  ;;  %v1487_v29 = vand.u32 2147483647, %v3773_v35 }
 0x53d   :  { %3784 = vlog2.f32 %v1490_v41  ;;  %v1494_v9 = vadd.f32 1.0, %v1493_v60  ;;  %vm4676_vm4 = vcmp.lt.f32.partialorder %v1496_v53, 0.0004427343 }
 0x53e   :  { %v3775_v44 = vpop.eup %3774  ;;  %3786 = vlog2.f32 %v1481_v42  ;;  %v1485_v8 = vadd.f32 1.0, %v1484_v37  ;;  %vm1488_vm5 = vcmp.lt.f32.partialorder %v1487_v29, 0.0004427343 }
 0x53f   :  { %v3777_v45 = vpop.eup %3776  ;;  %v1508_v46 = vadd.f32 1.0, %v3775_v44  ;;  %v1511_v40 = vmul.f32 -0.5, %v3775_v44  ;;  %v1495_v3 = vmul.f32 %v3771_v33, %v1494_v9  ;;  %v1514_v20 = vand.u32 2147483647, %v3775_v44 }
 0x540   :  { %v1499_v11 = vadd.f32 1.0, %v3777_v45  ;;  %v1502_v62 = vmul.f32 -0.5, %v3777_v45  ;;  %v1486_v32 = vmul.f32 %v3773_v35, %v1485_v8  ;;  %v1505_v23 = vand.u32 2147483647, %v3777_v45 }
 0x541   :  { %3788 = vlog2.f32 %v1508_v46  ;;  %v1512_v6 = vadd.f32 1.0, %v1511_v40  ;;  %vm1515_vm6 = vcmp.lt.f32.partialorder %v1514_v20, 0.0004427343  ;;  %v1447_v20 = vmin.f32 %v4662_v38, 0.0  ;;  %v2994_v38 = vld [vmem:[%s5068_s3 + $0x120] sm:$0xff] }
 0x542   :  { %v4665_v49 = vpop.eup %3778  ;;  %3790 = vlog2.f32 %v1499_v11  ;;  %v1503_v2 = vadd.f32 1.0, %v1502_v62  ;;  %vm1506_vm7 = vcmp.lt.f32.partialorder %v1505_v23, 0.0004427343  ;;  %v1445_v11 = vmin.f32 %v4655_v25, 0.0 }
 0x543   :  { %v4667_v5 = vpop.eup %3780  ;;  %v1526_v54 = vadd.f32 1.0, %v4665_v49  ;;  %v1529_v10 = vmul.f32 -0.5, %v4665_v49  ;;  %v1513_v14 = vmul.f32 %v3775_v44, %v1512_v6  ;;  %v1532_v30 = vand.u32 2147483647, %v4665_v49 }
 0x544   :  { %v1517_v55 = vadd.f32 1.0, %v4667_v5  ;;  %v1520_v18 = vmul.f32 -0.5, %v4667_v5  ;;  %v1504_v22 = vmul.f32 %v3777_v45, %v1503_v2  ;;  %v1523_v0 = vand.u32 2147483647, %v4667_v5  ;;  %v2996_v2 = vld [vmem:[%s5068_s3 + $0x130] sm:$0xff] }
 0x545   :  { %3792 = vlog2.f32 %v1526_v54  ;;  %v1530_v15 = vadd.f32 1.0, %v1529_v10  ;;  %v1446_v44 = vmin.f32 %v4653_v21, 0.0  ;;  %vm1533_vm8 = vcmp.lt.f32.partialorder %v1532_v30, 0.0004427343  ;;  %v2992_v10 = vld [vmem:[%s5068_s3 + $0x110] sm:$0xff] }
 0x546   :  { %v4672_v50 = vpop.eup %3782  ;;  %3794 = vlog2.f32 %v1517_v55  ;;  %v1521_v34 = vadd.f32 1.0, %v1520_v18  ;;  %vm1524_vm9 = vcmp.lt.f32.partialorder %v1523_v0, 0.0004427343  ;;  %v2997_v18 = vld [vmem:[%s5068_s3 + $0x138] sm:$0xff] }
 0x547   :  { %v3785_v52 = vpop.eup %3784  ;;  %3796 = vpow2.f32 %v1477_v56  ;;  %v1544_v36 = vadd.f32 1.0, %v4672_v50  ;;  %v1531_v31 = vmul.f32 %v4665_v49, %v1530_v15  ;;  %v1547_v49 = vmul.f32 -0.5, %v4672_v50 }
 0x548   :  { %v3787_v7 = vpop.eup %3786  ;;  %v1492_v1 = vmul.f32 0.6931472, %v3785_v52  ;;  %v1522_v60 = vmul.f32 %v4667_v5, %v1521_v34  ;;  %v1550_v56 = vand.u32 2147483647, %v4672_v50  ;;  %v1448_v52 = vmin.f32 %v4659_v26, 0.0  ;;  %v2993_v26 = vld [vmem:[%s5068_s3 + $0x118] sm:$0xff] }
 0x549   :  { %v1483_v16 = vmul.f32 0.6931472, %v3787_v7  ;;  %3798 = vlog2.f32 %v1544_v36  ;;  %v1548_v55 = vadd.f32 1.0, %v1547_v49  ;;  %v3014_v36 = vld [vmem:[%s5068_s3 + $0x140] sm:$0xff] }
 0x54a   :  { %v1498_v19 = vsel %vm4676_vm4, %v1495_v3, %v1492_v1  ;;  %vm1551_vm10 = vcmp.lt.f32.partialorder %v1550_v56, 0.0004427343  ;;  %3405 = vmatprep.mubr.msk.f32.mxu0 %vm390_vm1, %v3014_v36 }
 0x54b   :  { %v3789_v24 = vpop.eup %3788  ;;  %v1554_v27 = vsub.f32 %v1442_v61, %v1498_v19  ;;  %v1489_v12 = vsel %vm1488_vm5, %v1486_v32, %v1483_v16  ;;  %v1549_v61 = vmul.f32 %v4672_v50, %v1548_v55  ;;  %v2991_v50 = vld [vmem:[%s5068_s3 + $0x108] sm:$0xff]  ;;  %v1587_v19 = vpop.permute.xlu1 %1586 }
 0x54c   :  { %v3791_v13 = vpop.eup %3790  ;;  %v1553_v47 = vsub.f32 %v1441_v51, %v1489_v12  ;;  %v1510_v17 = vmul.f32 0.6931472, %v3789_v24  ;;  %v2995_v16 = vld [vmem:[%s5068_s3 + $0x128] sm:$0xff] }
 0x54d   :  { %v1501_v58 = vmul.f32 0.6931472, %v3791_v13 }
 0x54e   :  { %v1516_v43 = vsel %vm1515_vm6, %v1513_v14, %v1510_v17  ;;  %v3556_v28 = vpack.c.bf16 %v1554_v27, %v1553_v47 }
 0x54f   :  { %v3793_v63 = vpop.eup %3792  ;;  %v1556_v33 = vsub.f32 %v1444_v4, %v1516_v43  ;;  %v1507_v57 = vsel %vm1506_vm7, %v1504_v22, %v1501_v58  ;;  %v1597_v23 = vpop.permute.xlu1 %1596 }
 0x550   :  { %v3795_v35 = vpop.eup %3794  ;;  %v1555_v41 = vsub.f32 %v1443_v48, %v1507_v57  ;;  %v1528_v42 = vmul.f32 0.6931472, %v3793_v63  ;;  %3557 = vmatprep.subr.bf16.mxu1 %v3556_v28  ;;  %v1582_v48 = vpop.permute.xlu0 %1581 }
 0x551   :  { %v1519_v45 = vmul.f32 0.6931472, %v3795_v35  ;;  %3559 = vmatpush3.bf16.msra.mxu1 %v3556_v28  ;;  %v3797_v46 = vpop.eup %3796 }
 0x552   :  { %v1534_v37 = vsel %vm1533_vm8, %v1531_v31, %v1528_v42  ;;  %v3560_v39 = vpack.c.bf16 %v1556_v33, %v1555_v41  ;;  %v1535_v40 = vadd.f32 1.0, %v3797_v46  ;;  %v1538_v5 = vmul.f32 -0.5, %v3797_v46 }
 0x553   :  { %v1558_v9 = vsub.f32 %v1446_v44, %v1534_v37  ;;  %v1525_v53 = vsel %vm1524_vm9, %v1522_v60, %v1519_v45  ;;  %v3799_v8 = vpop.eup %3798  ;;  %v1541_v51 = vand.u32 2147483647, %v3797_v46  ;;  %v1607_v34 = vpop.permute.xlu1 %1606 }
 0x554   :  { %v1557_v54 = vsub.f32 %v1445_v11, %v1525_v53  ;;  %3561 = vmatprep.subr.bf16.mxu1 %v3560_v39  ;;  %3800 = vlog2.f32 %v1535_v40  ;;  %v1546_v25 = vmul.f32 0.6931472, %v3799_v8  ;;  %v1539_v62 = vadd.f32 1.0, %v1538_v5  ;;  %v1592_v13 = vpop.permute.xlu0 %1591 }
 0x555   :  { %3563 = vmatpush3.bf16.msra.mxu1 %v3560_v39  ;;  %vm1542_vm11 = vcmp.lt.f32.partialorder %v1541_v51, 0.0004427343 }
 0x556   :  { %v3564_v21 = vpack.c.bf16 %v1558_v9, %v1557_v54  ;;  %v1552_v29 = vsel %vm1551_vm10, %v1549_v61, %v1546_v25  ;;  %v1540_v59 = vmul.f32 %v3797_v46, %v1539_v62 }
 0x557   :  { %v1560_v6 = vsub.f32 %v1448_v52, %v1552_v29  ;;  %v1617_v11 = vpop.permute.xlu1 %1616 }
 0x558   :  { %3565 = vmatprep.subr.bf16.mxu1 %v3564_v21  ;;  %v1602_v41 = vpop.permute.xlu0 %1601 }
 0x559   :  { %3567 = vmatpush3.bf16.msra.mxu1 %v3564_v21 }
 0x55c   :  { %v1612_v5 = vpop.permute.xlu0 %1611 }
 0x55e   :  { %v3801_v4 = vpop.eup %3800 }
 0x55f   :  { %v1537_v3 = vmul.f32 0.6931472, %v3801_v4 }
 0x561   :  { %v1543_v7 = vsel %vm1542_vm11, %v1540_v59, %v1537_v3 }
 0x562   :  { %v1559_v1 = vsub.f32 %v1447_v20, %v1543_v7 }
 0x564   :  { %v3568_v32 = vpack.c.bf16 %v1560_v6, %v1559_v1 }
 0x566   :  { %3569 = vmatprep.subr.bf16.mxu1 %v3568_v32 }
 0x567   :  { %3571 = vmatpush3.bf16.msra.mxu1 %v3568_v32 }
 0x56a   :  { %3378 = vmatmul.mubr.msk.f32.vlgmr.msra.gmra.mrb[16].mxu1 %vm390_vm1, %v2991_v50 }
 0x56b   :  { %3380 = vmatprep.mubr.msk.f32.mxu1 %vm390_vm1, %v2992_v10 }
 0x56e   :  { %3381 = vmatmul.mubr.msk.f32.gmra.mrb[18].mxu1 %vm390_vm1, %v2993_v26 }
 0x56f   :  { %3383 = vmatprep.mubr.msk.f32.mxu1 %vm390_vm1, %v2994_v38 }
 0x572   :  { %3384 = vmatmul.mubr.msk.f32.gmra.mrb[20].mxu1 %vm390_vm1, %v2995_v16 }
 0x573   :  { %3386 = vmatprep.mubr.msk.f32.mxu1 %vm390_vm1, %v2996_v2 }
 0x576   :  { %3387 = vmatmul.mubr.msk.f32.gmra.mrb[22].mxu1 %vm390_vm1, %v2997_v18 }
 0x63d   :  { %v3379_v24 = vpop.f32.mrb[16].mxu1 }
 0x63e   :  { %v4729_v27 = vadd.f32 %v3379_v24, %v1587_v19  ;;  %v1709_v12 = vpop.f32.mrb[17].mxu1 }
 0x63f   :  { %v4731_v14 = vadd.f32 %v1709_v12, %v1582_v48 }
 0x640   :  { %v1757_v47 = vand.u32 2147483647, %v4729_v27 }
 0x641   :  { %v1756_v17 = vand.u32 2147483647, %v4731_v14  ;;  %v3382_v15 = vpop.f32.mrb[18].mxu1 }
 0x642   :  { %v1765_v30 = vsub.f32 0.0, %v1757_v47  ;;  %v4735_v58 = vadd.f32 %v3382_v15, %v1597_v23  ;;  %v1719_v22 = vpop.f32.mrb[19].mxu1  ;;  %v1749_v23 = vmin.f32 %v4729_v27, 0.0 }
 0x643   :  { %v1764_v43 = vsub.f32 0.0, %v1756_v17  ;;  %v4737_v0 = vadd.f32 %v1719_v22, %v1592_v13  ;;  %v1748_v13 = vmin.f32 %v4731_v14, 0.0 }
 0x644   :  { %v1774_v28 = vmul.f32 1.442695, %v1765_v30  ;;  %v1759_v63 = vand.u32 2147483647, %v4735_v58  ;;  %v1751_v17 = vmin.f32 %v4735_v58, 0.0 }
 0x645   :  { %v1772_v33 = vmul.f32 1.442695, %v1764_v43  ;;  %v1758_v57 = vand.u32 2147483647, %v4737_v0  ;;  %v3385_v35 = vpop.f32.mrb[20].mxu1 }
 0x646   :  { %3802 = vpow2.f32 %v1774_v28  ;;  %v1767_v42 = vsub.f32 0.0, %v1759_v63  ;;  %v4741_v31 = vadd.f32 %v3385_v35, %v1607_v34  ;;  %v1729_v44 = vpop.f32.mrb[21].mxu1 }
 0x647   :  { %3804 = vpow2.f32 %v1772_v33  ;;  %v1766_v45 = vsub.f32 0.0, %v1758_v57  ;;  %v4743_v60 = vadd.f32 %v1729_v44, %v1602_v41 }
 0x648   :  { %v1778_v46 = vmul.f32 1.442695, %v1767_v42  ;;  %v1761_v37 = vand.u32 2147483647, %v4741_v31  ;;  %v1750_v42 = vmin.f32 %v4737_v0, 0.0 }
 0x649   :  { %v1776_v39 = vmul.f32 1.442695, %v1766_v45  ;;  %v1760_v9 = vand.u32 2147483647, %v4743_v60  ;;  %v3388_v53 = vpop.f32.mrb[22].mxu1 }
 0x64a   :  { %3806 = vpow2.f32 %v1778_v46  ;;  %v1769_v40 = vsub.f32 0.0, %v1761_v37  ;;  %v4747_v54 = vadd.f32 %v3388_v53, %v1617_v11  ;;  %v1739_v49 = vpop.f32.mrb[23].mxu1 }
 0x64b   :  { %3808 = vpow2.f32 %v1776_v39  ;;  %v1768_v21 = vsub.f32 0.0, %v1760_v9  ;;  %v4750_v61 = vadd.f32 %v1739_v49, %v1612_v5 }
 0x64c   :  { %v1782_v8 = vmul.f32 1.442695, %v1769_v40  ;;  %v1763_v55 = vand.u32 2147483647, %v4747_v54 }
 0x64d   :  { %v1780_v56 = vmul.f32 1.442695, %v1768_v21  ;;  %v1762_v3 = vand.u32 2147483647, %v4750_v61 }
 0x64e   :  { %3810 = vpow2.f32 %v1782_v8  ;;  %v1771_v25 = vsub.f32 0.0, %v1763_v55 }
 0x64f   :  { %3812 = vpow2.f32 %v1780_v56  ;;  %v1770_v50 = vsub.f32 0.0, %v1762_v3 }
 0x650   :  { %v3803_v62 = vpop.eup %3802  ;;  %v1786_v51 = vmul.f32 1.442695, %v1771_v25 }
 0x651   :  { %v3805_v29 = vpop.eup %3804  ;;  %v1797_v4 = vadd.f32 1.0, %v3803_v62  ;;  %v1800_v20 = vmul.f32 -0.5, %v3803_v62  ;;  %v1803_v16 = vand.u32 2147483647, %v3803_v62  ;;  %v1784_v48 = vmul.f32 1.442695, %v1770_v50 }
 0x652   :  { %v1788_v52 = vadd.f32 1.0, %v3805_v29  ;;  %3814 = vpow2.f32 %v1786_v51  ;;  %v1791_v1 = vmul.f32 -0.5, %v3805_v29  ;;  %v1794_v47 = vand.u32 2147483647, %v3805_v29 }
 0x653   :  { %3816 = vlog2.f32 %v1797_v4  ;;  %v1801_v38 = vadd.f32 1.0, %v1800_v20  ;;  %vm4764_vm12 = vcmp.lt.f32.partialorder %v1803_v16, 0.0004427343 }
 0x654   :  { %v3807_v59 = vpop.eup %3806  ;;  %3818 = vlog2.f32 %v1788_v52  ;;  %v1792_v36 = vadd.f32 1.0, %v1791_v1  ;;  %vm1795_vm13 = vcmp.lt.f32.partialorder %v1794_v47, 0.0004427343 }
 0x655   :  { %v3809_v6 = vpop.eup %3808  ;;  %v1815_v7 = vadd.f32 1.0, %v3807_v59  ;;  %v1818_v2 = vmul.f32 -0.5, %v3807_v59  ;;  %v1802_v30 = vmul.f32 %v3803_v62, %v1801_v38  ;;  %v1821_v43 = vand.u32 2147483647, %v3807_v59 }
 0x656   :  { %v1806_v32 = vadd.f32 1.0, %v3809_v6  ;;  %v1809_v24 = vmul.f32 -0.5, %v3809_v6  ;;  %v1793_v63 = vmul.f32 %v3805_v29, %v1792_v36  ;;  %v1812_v44 = vand.u32 2147483647, %v3809_v6 }
 0x657   :  { %3820 = vlog2.f32 %v1815_v7  ;;  %v1819_v34 = vadd.f32 1.0, %v1818_v2  ;;  %vm1822_vm14 = vcmp.lt.f32.partialorder %v1821_v43, 0.0004427343  ;;  %v1754_v43 = vmin.f32 %v4750_v61, 0.0  ;;  %v3018_v61 = vld [vmem:[%s5068_s3 + $0x160] sm:$0xff] }
 0x658   :  { %v4753_v10 = vpop.eup %3810  ;;  %3822 = vlog2.f32 %v1806_v32  ;;  %v1810_v14 = vadd.f32 1.0, %v1809_v24  ;;  %vm1813_vm15 = vcmp.lt.f32.partialorder %v1812_v44, 0.0004427343  ;;  %v1752_v32 = vmin.f32 %v4743_v60, 0.0 }
 0x659   :  { %v4755_v26 = vpop.eup %3812  ;;  %v1833_v18 = vadd.f32 1.0, %v4753_v10  ;;  %v1836_v33 = vmul.f32 -0.5, %v4753_v10  ;;  %v1820_v11 = vmul.f32 %v3807_v59, %v1819_v34  ;;  %v1839_v49 = vand.u32 2147483647, %v4753_v10 }
 0x65a   :  { %v1824_v19 = vadd.f32 1.0, %v4755_v26  ;;  %v1827_v35 = vmul.f32 -0.5, %v4755_v26  ;;  %v1811_v8 = vmul.f32 %v3809_v6, %v1810_v14  ;;  %v1830_v0 = vand.u32 2147483647, %v4755_v26  ;;  %v3020_v14 = vld [vmem:[%s5068_s3 + $0x170] sm:$0xff] }
 0x65b   :  { %3824 = vlog2.f32 %v1833_v18  ;;  %v1837_v40 = vadd.f32 1.0, %v1836_v33  ;;  %v1753_v59 = vmin.f32 %v4741_v31, 0.0  ;;  %vm1840_vm0 = vcmp.lt.f32.partialorder %v1839_v49, 0.0004427343  ;;  %v3016_v33 = vld [vmem:[%s5068_s3 + $0x150] sm:$0xff] }
 0x65c   :  { %v4760_v12 = vpop.eup %3814  ;;  %3826 = vlog2.f32 %v1824_v19  ;;  %v1828_v55 = vadd.f32 1.0, %v1827_v35  ;;  %vm1831_vm2 = vcmp.lt.f32.partialorder %v1830_v0, 0.0004427343  ;;  %v3021_v35 = vld [vmem:[%s5068_s3 + $0x178] sm:$0xff] }
 0x65d   :  { %v3817_v15 = vpop.eup %3816  ;;  %3828 = vpow2.f32 %v1784_v48  ;;  %v1851_v58 = vadd.f32 1.0, %v4760_v12  ;;  %v1838_v3 = vmul.f32 %v4753_v10, %v1837_v40  ;;  %v1854_v10 = vmul.f32 -0.5, %v4760_v12 }
 0x65e   :  { %v3819_v28 = vpop.eup %3818  ;;  %v1799_v27 = vmul.f32 0.6931472, %v3817_v15  ;;  %v1829_v20 = vmul.f32 %v4755_v26, %v1828_v55  ;;  %v1857_v48 = vand.u32 2147483647, %v4760_v12  ;;  %v1755_v15 = vmin.f32 %v4747_v54, 0.0  ;;  %v3017_v54 = vld [vmem:[%s5068_s3 + $0x158] sm:$0xff] }
 0x65f   :  { %v1790_v57 = vmul.f32 0.6931472, %v3819_v28  ;;  %3830 = vlog2.f32 %v1851_v58  ;;  %v1855_v19 = vadd.f32 1.0, %v1854_v10  ;;  %v3038_v58 = vld [vmem:[%s5068_s3 + $0x180] sm:$0xff] }
 0x660   :  { %v1805_v41 = vsel %vm4764_vm12, %v1802_v30, %v1799_v27  ;;  %vm1858_vm3 = vcmp.lt.f32.partialorder %v1857_v48, 0.0004427343  ;;  %3433 = vmatprep.mubr.msk.f32.mxu1 %vm390_vm1, %v3038_v58 }
 0x661   :  { %v3821_v45 = vpop.eup %3820  ;;  %v1861_v46 = vsub.f32 %v1749_v23, %v1805_v41  ;;  %v1796_v37 = vsel %vm1795_vm13, %v1793_v63, %v1790_v57  ;;  %v1856_v23 = vmul.f32 %v4760_v12, %v1855_v19  ;;  %v3015_v12 = vld [vmem:[%s5068_s3 + $0x148] sm:$0xff]  ;;  %v1894_v41 = vpop.permute.xlu1 %1893 }
 0x662   :  { %v3823_v39 = vpop.eup %3822  ;;  %v1860_v9 = vsub.f32 %v1748_v13, %v1796_v37  ;;  %v1817_v53 = vmul.f32 0.6931472, %v3821_v45  ;;  %v3019_v57 = vld [vmem:[%s5068_s3 + $0x168] sm:$0xff] }
 0x663   :  { %v1808_v21 = vmul.f32 0.6931472, %v3823_v39 }
 0x664   :  { %v1823_v5 = vsel %vm1822_vm14, %v1820_v11, %v1817_v53  ;;  %v3572_v56 = vpack.c.bf16 %v1861_v46, %v1860_v9 }
 0x665   :  { %v3825_v25 = vpop.eup %3824  ;;  %v1863_v62 = vsub.f32 %v1751_v17, %v1823_v5  ;;  %v1814_v51 = vsel %vm1813_vm15, %v1811_v8, %v1808_v21  ;;  %v1904_v44 = vpop.permute.xlu1 %1903 }
 0x666   :  { %v3827_v29 = vpop.eup %3826  ;;  %v1862_v4 = vsub.f32 %v1750_v42, %v1814_v51  ;;  %v1835_v52 = vmul.f32 0.6931472, %v3825_v25  ;;  %3573 = vmatprep.subr.bf16.mxu0 %v3572_v56  ;;  %v1889_v42 = vpop.permute.xlu0 %1888 }
 0x667   :  { %v1826_v6 = vmul.f32 0.6931472, %v3827_v29  ;;  %3575 = vmatpush3.bf16.msra.mxu0 %v3572_v56  ;;  %v3829_v7 = vpop.eup %3828 }
 0x668   :  { %v1841_v1 = vsel %vm1840_vm0, %v1838_v3, %v1835_v52  ;;  %v3576_v50 = vpack.c.bf16 %v1863_v62, %v1862_v4  ;;  %v1842_v2 = vadd.f32 1.0, %v3829_v7  ;;  %v1845_v26 = vmul.f32 -0.5, %v3829_v7 }
 0x669   :  { %v1865_v38 = vsub.f32 %v1753_v59, %v1841_v1  ;;  %v1832_v16 = vsel %vm1831_vm2, %v1829_v20, %v1826_v6  ;;  %v3831_v36 = vpop.eup %3830  ;;  %v1848_v13 = vand.u32 2147483647, %v3829_v7  ;;  %v1914_v55 = vpop.permute.xlu1 %1913 }
 0x66a   :  { %v1864_v18 = vsub.f32 %v1752_v32, %v1832_v16  ;;  %3577 = vmatprep.subr.bf16.mxu0 %v3576_v50  ;;  %3832 = vlog2.f32 %v1842_v2  ;;  %v1853_v60 = vmul.f32 0.6931472, %v3831_v36  ;;  %v1846_v24 = vadd.f32 1.0, %v1845_v26  ;;  %v1899_v39 = vpop.permute.xlu0 %1898 }
 0x66b   :  { %3579 = vmatpush3.bf16.msra.mxu0 %v3576_v50  ;;  %vm1849_vm4 = vcmp.lt.f32.partialorder %v1848_v13, 0.0004427343 }
 0x66c   :  { %v3580_v31 = vpack.c.bf16 %v1865_v38, %v1864_v18  ;;  %v1859_v47 = vsel %vm1858_vm3, %v1856_v23, %v1853_v60  ;;  %v1847_v22 = vmul.f32 %v3829_v7, %v1846_v24 }
 0x66d   :  { %v1867_v34 = vsub.f32 %v1755_v15, %v1859_v47  ;;  %v1924_v32 = vpop.permute.xlu1 %1923 }
 0x66e   :  { %3581 = vmatprep.subr.bf16.mxu0 %v3580_v31  ;;  %v1909_v4 = vpop.permute.xlu0 %1908 }
 0x66f   :  { %3583 = vmatpush3.bf16.msra.mxu0 %v3580_v31 }
 0x672   :  { %v1919_v26 = vpop.permute.xlu0 %1918 }
 0x674   :  { %v3833_v17 = vpop.eup %3832 }
 0x675   :  { %v1844_v30 = vmul.f32 0.6931472, %v3833_v17 }
 0x677   :  { %v1850_v28 = vsel %vm1849_vm4, %v1847_v22, %v1844_v30 }
 0x678   :  { %v1866_v27 = vsub.f32 %v1754_v43, %v1850_v28 }
 0x67a   :  { %v3584_v63 = vpack.c.bf16 %v1867_v34, %v1866_v27 }
 0x67c   :  { %3585 = vmatprep.subr.bf16.mxu0 %v3584_v63 }
 0x67d   :  { %3587 = vmatpush3.bf16.msra.mxu0 %v3584_v63 }
 0x680   :  { %3406 = vmatmul.mubr.msk.f32.vlgmr.msra.gmra.mrb[24].mxu0 %vm390_vm1, %v3015_v12 }
 0x681   :  { %3408 = vmatprep.mubr.msk.f32.mxu0 %vm390_vm1, %v3016_v33 }
 0x684   :  { %3409 = vmatmul.mubr.msk.f32.gmra.mrb[26].mxu0 %vm390_vm1, %v3017_v54 }
 0x685   :  { %3411 = vmatprep.mubr.msk.f32.mxu0 %vm390_vm1, %v3018_v61 }
 0x688   :  { %3412 = vmatmul.mubr.msk.f32.gmra.mrb[28].mxu0 %vm390_vm1, %v3019_v57 }
 0x689   :  { %3414 = vmatprep.mubr.msk.f32.mxu0 %vm390_vm1, %v3020_v14 }
 0x68c   :  { %3415 = vmatmul.mubr.msk.f32.gmra.mrb[30].mxu0 %vm390_vm1, %v3021_v35 }
 0x753   :  { %v3407_v45 = vpop.f32.mrb[24].mxu0 }
 0x754   :  { %v4817_v46 = vadd.f32 %v3407_v45, %v1894_v41  ;;  %v2016_v37 = vpop.f32.mrb[25].mxu0 }
 0x755   :  { %v4819_v11 = vadd.f32 %v2016_v37, %v1889_v42 }
 0x756   :  { %v2064_v9 = vand.u32 2147483647, %v4817_v46 }
 0x757   :  { %v2063_v53 = vand.u32 2147483647, %v4819_v11  ;;  %v3410_v40 = vpop.f32.mrb[26].mxu0 }
 0x758   :  { %v2072_v49 = vsub.f32 0.0, %v2064_v9  ;;  %v4823_v21 = vadd.f32 %v3410_v40, %v1904_v44  ;;  %v2026_v8 = vpop.f32.mrb[27].mxu0  ;;  %v2056_v44 = vmin.f32 %v4817_v46, 0.0 }
 0x759   :  { %v2071_v5 = vsub.f32 0.0, %v2063_v53  ;;  %v4825_v0 = vadd.f32 %v2026_v8, %v1899_v39  ;;  %v2055_v39 = vmin.f32 %v4819_v11, 0.0 }
 0x75a   :  { %v2081_v56 = vmul.f32 1.442695, %v2072_v49  ;;  %v2066_v25 = vand.u32 2147483647, %v4823_v21  ;;  %v2058_v53 = vmin.f32 %v4823_v21, 0.0 }
 0x75b   :  { %v2079_v62 = vmul.f32 1.442695, %v2071_v5  ;;  %v2065_v51 = vand.u32 2147483647, %v4825_v0  ;;  %v3413_v29 = vpop.f32.mrb[28].mxu0 }
 0x75c   :  { %3834 = vpow2.f32 %v2081_v56  ;;  %v2074_v52 = vsub.f32 0.0, %v2066_v25  ;;  %v4829_v3 = vadd.f32 %v3413_v29, %v1914_v55  ;;  %v2036_v59 = vpop.f32.mrb[29].mxu0 }
 0x75d   :  { %3836 = vpow2.f32 %v2079_v62  ;;  %v2073_v6 = vsub.f32 0.0, %v2065_v51  ;;  %v4831_v20 = vadd.f32 %v2036_v59, %v1909_v4 }
 0x75e   :  { %v2085_v7 = vmul.f32 1.442695, %v2074_v52  ;;  %v2068_v1 = vand.u32 2147483647, %v4829_v3  ;;  %v2057_v52 = vmin.f32 %v4825_v0, 0.0 }
 0x75f   :  { %v2083_v50 = vmul.f32 1.442695, %v2073_v6  ;;  %v2067_v38 = vand.u32 2147483647, %v4831_v20  ;;  %v3416_v16 = vpop.f32.mrb[30].mxu0 }
 0x760   :  { %3838 = vpow2.f32 %v2085_v7  ;;  %v2076_v2 = vsub.f32 0.0, %v2068_v1  ;;  %v4835_v18 = vadd.f32 %v3416_v16, %v1924_v32  ;;  %v2046_v10 = vpop.f32.mrb[31].mxu0 }
 0x761   :  { %3840 = vpow2.f32 %v2083_v50  ;;  %v2075_v31 = vsub.f32 0.0, %v2067_v38  ;;  %v4838_v23 = vadd.f32 %v2046_v10, %v1919_v26 }
 0x762   :  { %v2089_v36 = vmul.f32 1.442695, %v2076_v2  ;;  %v2070_v19 = vand.u32 2147483647, %v4835_v18 }
 0x763   :  { %v2087_v48 = vmul.f32 1.442695, %v2075_v31  ;;  %v2069_v30 = vand.u32 2147483647, %v4838_v23 }
 0x764   :  { %3842 = vpow2.f32 %v2089_v36  ;;  %v2078_v60 = vsub.f32 0.0, %v2070_v19 }
 0x765   :  { %3844 = vpow2.f32 %v2087_v48  ;;  %v2077_v12 = vsub.f32 0.0, %v2069_v30 }
 0x766   :  { %v3835_v24 = vpop.eup %3834  ;;  %v2093_v13 = vmul.f32 1.442695, %v2078_v60 }
 0x767   :  { %v3837_v47 = vpop.eup %3836  ;;  %v2104_v17 = vadd.f32 1.0, %v3835_v24  ;;  %v2107_v43 = vmul.f32 -0.5, %v3835_v24  ;;  %v2110_v57 = vand.u32 2147483647, %v3835_v24  ;;  %v2091_v42 = vmul.f32 1.442695, %v2077_v12 }
 0x768   :  { %v2095_v15 = vadd.f32 1.0, %v3837_v47  ;;  %3846 = vpow2.f32 %v2093_v13  ;;  %v2098_v27 = vmul.f32 -0.5, %v3837_v47  ;;  %v2101_v9 = vand.u32 2147483647, %v3837_v47 }
 0x769   :  { %3848 = vlog2.f32 %v2104_v17  ;;  %v2108_v61 = vadd.f32 1.0, %v2107_v43  ;;  %vm4852_vm5 = vcmp.lt.f32.partialorder %v2110_v57, 0.0004427343 }
 0x76a   :  { %v3839_v22 = vpop.eup %3838  ;;  %3850 = vlog2.f32 %v2095_v15  ;;  %v2099_v58 = vadd.f32 1.0, %v2098_v27  ;;  %vm2102_vm6 = vcmp.lt.f32.partialorder %v2101_v9, 0.0004427343 }
 0x76b   :  { %v3841_v34 = vpop.eup %3840  ;;  %v2122_v28 = vadd.f32 1.0, %v3839_v22  ;;  %v2125_v14 = vmul.f32 -0.5, %v3839_v22  ;;  %v2109_v49 = vmul.f32 %v3835_v24, %v2108_v61  ;;  %v2128_v5 = vand.u32 2147483647, %v3839_v22 }
 0x76c   :  { %v2113_v63 = vadd.f32 1.0, %v3841_v34  ;;  %v2116_v45 = vmul.f32 -0.5, %v3841_v34  ;;  %v2100_v25 = vmul.f32 %v3837_v47, %v2099_v58  ;;  %v2119_v59 = vand.u32 2147483647, %v3841_v34 }
 0x76d   :  { %3852 = vlog2.f32 %v2122_v28  ;;  %v2126_v55 = vadd.f32 1.0, %v2125_v14  ;;  %vm2129_vm7 = vcmp.lt.f32.partialorder %v2128_v5, 0.0004427343  ;;  %v2061_v5 = vmin.f32 %v4838_v23, 0.0  ;;  %v3042_v23 = vld [vmem:[%s5068_s3 + $0x1a0] sm:$0xff] }
 0x76e   :  { %v4841_v33 = vpop.eup %3842  ;;  %3854 = vlog2.f32 %v2113_v63  ;;  %v2117_v11 = vadd.f32 1.0, %v2116_v45  ;;  %vm2120_vm8 = vcmp.lt.f32.partialorder %v2119_v59, 0.0004427343  ;;  %v2059_v63 = vmin.f32 %v4831_v20, 0.0 }
 0x76f   :  { %v4843_v54 = vpop.eup %3844  ;;  %v2140_v35 = vadd.f32 1.0, %v4841_v33  ;;  %v2143_v62 = vmul.f32 -0.5, %v4841_v33  ;;  %v2127_v32 = vmul.f32 %v3839_v22, %v2126_v55  ;;  %v2146_v10 = vand.u32 2147483647, %v4841_v33 }
 0x770   :  { %v2131_v41 = vadd.f32 1.0, %v4843_v54  ;;  %v2134_v29 = vmul.f32 -0.5, %v4843_v54  ;;  %v2118_v36 = vmul.f32 %v3841_v34, %v2117_v11  ;;  %v2137_v0 = vand.u32 2147483647, %v4843_v54  ;;  %v3044_v11 = vld [vmem:[%s5068_s3 + $0x1b0] sm:$0xff] }
 0x771   :  { %3856 = vlog2.f32 %v2140_v35  ;;  %v2144_v2 = vadd.f32 1.0, %v2143_v62  ;;  %v2060_v22 = vmin.f32 %v4829_v3, 0.0  ;;  %vm2147_vm9 = vcmp.lt.f32.partialorder %v2146_v10, 0.0004427343  ;;  %v3040_v62 = vld [vmem:[%s5068_s3 + $0x190] sm:$0xff] }
 0x772   :  { %v4848_v37 = vpop.eup %3846  ;;  %3858 = vlog2.f32 %v2131_v41  ;;  %v2135_v19 = vadd.f32 1.0, %v2134_v29  ;;  %vm2138_vm10 = vcmp.lt.f32.partialorder %v2137_v0, 0.0004427343  ;;  %v3045_v29 = vld [vmem:[%s5068_s3 + $0x1b8] sm:$0xff] }
 0x773   :  { %v3849_v40 = vpop.eup %3848  ;;  %3860 = vpow2.f32 %v2091_v42  ;;  %v2158_v21 = vadd.f32 1.0, %v4848_v37  ;;  %v2145_v30 = vmul.f32 %v4841_v33, %v2144_v2  ;;  %v2161_v33 = vmul.f32 -0.5, %v4848_v37 }
 0x774   :  { %v3851_v56 = vpop.eup %3850  ;;  %v2106_v46 = vmul.f32 0.6931472, %v3849_v40  ;;  %v2136_v43 = vmul.f32 %v4843_v54, %v2135_v19  ;;  %v2164_v42 = vand.u32 2147483647, %v4848_v37  ;;  %v2062_v40 = vmin.f32 %v4835_v18, 0.0  ;;  %v3041_v18 = vld [vmem:[%s5068_s3 + $0x198] sm:$0xff] }
 0x775   :  { %v2097_v51 = vmul.f32 0.6931472, %v3851_v56  ;;  %3862 = vlog2.f32 %v2158_v21  ;;  %v2162_v41 = vadd.f32 1.0, %v2161_v33  ;;  %v3062_v21 = vld [vmem:[%s5068_s3 + $0x1c0] sm:$0xff] }
 0x776   :  { %v2112_v4 = vsel %vm4852_vm5, %v2109_v49, %v2106_v46  ;;  %vm2165_vm11 = vcmp.lt.f32.partialorder %v2164_v42, 0.0004427343  ;;  %3461 = vmatprep.mubr.msk.f32.mxu0 %vm390_vm1, %v3062_v21 }
 0x777   :  { %v3853_v6 = vpop.eup %3852  ;;  %v2168_v7 = vsub.f32 %v2056_v44, %v2112_v4  ;;  %v2103_v1 = vsel %vm2102_vm6, %v2100_v25, %v2097_v51  ;;  %v2163_v44 = vmul.f32 %v4848_v37, %v2162_v41  ;;  %v3039_v37 = vld [vmem:[%s5068_s3 + $0x188] sm:$0xff]  ;;  %v2201_v4 = vpop.permute.xlu1 %2200 }
 0x778   :  { %v3855_v50 = vpop.eup %3854  ;;  %v2167_v38 = vsub.f32 %v2055_v39, %v2103_v1  ;;  %v2124_v16 = vmul.f32 0.6931472, %v3853_v6  ;;  %v3043_v51 = vld [vmem:[%s5068_s3 + $0x1a8] sm:$0xff] }
 0x779   :  { %v2115_v31 = vmul.f32 0.6931472, %v3855_v50 }
 0x77a   :  { %v2130_v26 = vsel %vm2129_vm7, %v2127_v32, %v2124_v16  ;;  %v3588_v48 = vpack.c.bf16 %v2168_v7, %v2167_v38 }
 0x77b   :  { %v3857_v60 = vpop.eup %3856  ;;  %v2170_v24 = vsub.f32 %v2058_v53, %v2130_v26  ;;  %v2121_v13 = vsel %vm2120_vm8, %v2118_v36, %v2115_v31  ;;  %v2211_v59 = vpop.permute.xlu1 %2210 }
 0x77c   :  { %v3859_v47 = vpop.eup %3858  ;;  %v2169_v17 = vsub.f32 %v2057_v52, %v2121_v13  ;;  %v2142_v15 = vmul.f32 0.6931472, %v3857_v60  ;;  %3589 = vmatprep.subr.bf16.mxu1 %v3588_v48  ;;  %v2196_v52 = vpop.permute.xlu0 %2195 }
 0x77d   :  { %v2133_v34 = vmul.f32 0.6931472, %v3859_v47  ;;  %3591 = vmatpush3.bf16.msra.mxu1 %v3588_v48  ;;  %v3861_v28 = vpop.eup %3860 }
 0x77e   :  { %v2148_v27 = vsel %vm2147_vm9, %v2145_v30, %v2142_v15  ;;  %v3592_v12 = vpack.c.bf16 %v2170_v24, %v2169_v17  ;;  %v2149_v14 = vadd.f32 1.0, %v3861_v28  ;;  %v2152_v54 = vmul.f32 -0.5, %v3861_v28 }
 0x77f   :  { %v2172_v61 = vsub.f32 %v2060_v22, %v2148_v27  ;;  %v2139_v57 = vsel %vm2138_vm10, %v2136_v43, %v2133_v34  ;;  %v3863_v58 = vpop.eup %3862  ;;  %v2155_v39 = vand.u32 2147483647, %v3861_v28  ;;  %v2221_v19 = vpop.permute.xlu1 %2220 }
 0x780   :  { %v2171_v35 = vsub.f32 %v2059_v63, %v2139_v57  ;;  %3593 = vmatprep.subr.bf16.mxu1 %v3592_v12  ;;  %3864 = vlog2.f32 %v2149_v14  ;;  %v2160_v20 = vmul.f32 0.6931472, %v3863_v58  ;;  %v2153_v45 = vadd.f32 1.0, %v2152_v54  ;;  %v2206_v50 = vpop.permute.xlu0 %2205 }
 0x781   :  { %3595 = vmatpush3.bf16.msra.mxu1 %v3592_v12  ;;  %vm2156_vm12 = vcmp.lt.f32.partialorder %v2155_v39, 0.0004427343 }
 0x782   :  { %v3596_v3 = vpack.c.bf16 %v2172_v61, %v2171_v35  ;;  %v2166_v9 = vsel %vm2165_vm11, %v2163_v44, %v2160_v20  ;;  %v2154_v8 = vmul.f32 %v3861_v28, %v2153_v45 }
 0x783   :  { %v2174_v55 = vsub.f32 %v2062_v40, %v2166_v9  ;;  %v2231_v63 = vpop.permute.xlu1 %2230 }
 0x784   :  { %3597 = vmatprep.subr.bf16.mxu1 %v3596_v3  ;;  %v2216_v17 = vpop.permute.xlu0 %2215 }
 0x785   :  { %3599 = vmatpush3.bf16.msra.mxu1 %v3596_v3 }
 0x788   :  { %v2226_v54 = vpop.permute.xlu0 %2225 }
 0x78a   :  { %v3865_v53 = vpop.eup %3864 }
 0x78b   :  { %v2151_v49 = vmul.f32 0.6931472, %v3865_v53 }
 0x78d   :  { %v2157_v56 = vsel %vm2156_vm12, %v2154_v8, %v2151_v49 }
 0x78e   :  { %v2173_v46 = vsub.f32 %v2061_v5, %v2157_v56 }
 0x790   :  { %v3600_v25 = vpack.c.bf16 %v2174_v55, %v2173_v46 }
 0x792   :  { %3601 = vmatprep.subr.bf16.mxu1 %v3600_v25 }
 0x793   :  { %3603 = vmatpush3.bf16.msra.mxu1 %v3600_v25 }
 0x796   :  { %3434 = vmatmul.mubr.msk.f32.vlgmr.msra.gmra.mrb[24].mxu1 %vm390_vm1, %v3039_v37 }
 0x797   :  { %3436 = vmatprep.mubr.msk.f32.mxu1 %vm390_vm1, %v3040_v62 }
 0x79a   :  { %3437 = vmatmul.mubr.msk.f32.gmra.mrb[26].mxu1 %vm390_vm1, %v3041_v18 }
 0x79b   :  { %3439 = vmatprep.mubr.msk.f32.mxu1 %vm390_vm1, %v3042_v23 }
 0x79e   :  { %3440 = vmatmul.mubr.msk.f32.gmra.mrb[28].mxu1 %vm390_vm1, %v3043_v51 }
 0x79f   :  { %3442 = vmatprep.mubr.msk.f32.mxu1 %vm390_vm1, %v3044_v11 }
 0x7a2   :  { %3443 = vmatmul.mubr.msk.f32.gmra.mrb[30].mxu1 %vm390_vm1, %v3045_v29 }
 0x869   :  { %v3435_v6 = vpop.f32.mrb[24].mxu1 }
 0x86a   :  { %v4905_v7 = vadd.f32 %v3435_v6, %v2201_v4  ;;  %v2323_v1 = vpop.f32.mrb[25].mxu1 }
 0x86b   :  { %v4907_v32 = vadd.f32 %v2323_v1, %v2196_v52 }
 0x86c   :  { %v2371_v38 = vand.u32 2147483647, %v4905_v7 }
 0x86d   :  { %v2370_v16 = vand.u32 2147483647, %v4907_v32  ;;  %v3438_v2 = vpop.f32.mrb[26].mxu1 }
 0x86e   :  { %v2379_v10 = vsub.f32 0.0, %v2371_v38  ;;  %v4911_v31 = vadd.f32 %v3438_v2, %v2211_v59  ;;  %v2333_v36 = vpop.f32.mrb[27].mxu1  ;;  %v2363_v59 = vmin.f32 %v4905_v7, 0.0 }
 0x86f   :  { %v2378_v26 = vsub.f32 0.0, %v2370_v16  ;;  %v4913_v0 = vadd.f32 %v2333_v36, %v2206_v50  ;;  %v2362_v50 = vmin.f32 %v4907_v32, 0.0 }
 0x870   :  { %v2388_v48 = vmul.f32 1.442695, %v2379_v10  ;;  %v2373_v60 = vand.u32 2147483647, %v4911_v31  ;;  %v2365_v16 = vmin.f32 %v4911_v31, 0.0 }
 0x871   :  { %v2386_v24 = vmul.f32 1.442695, %v2378_v26  ;;  %v2372_v13 = vand.u32 2147483647, %v4913_v0  ;;  %v3441_v47 = vpop.f32.mrb[28].mxu1 }
 0x872   :  { %3866 = vpow2.f32 %v2388_v48  ;;  %v2381_v15 = vsub.f32 0.0, %v2373_v60  ;;  %v4917_v30 = vadd.f32 %v3441_v47, %v2221_v19  ;;  %v2343_v22 = vpop.f32.mrb[29].mxu1 }
 0x873   :  { %3868 = vpow2.f32 %v2386_v24  ;;  %v2380_v34 = vsub.f32 0.0, %v2372_v13  ;;  %v4919_v43 = vadd.f32 %v2343_v22, %v2216_v17 }
 0x874   :  { %v2392_v28 = vmul.f32 1.442695, %v2381_v15  ;;  %v2375_v27 = vand.u32 2147483647, %v4917_v30  ;;  %v2364_v15 = vmin.f32 %v4913_v0, 0.0 }
 0x875   :  { %v2390_v12 = vmul.f32 1.442695, %v2380_v34  ;;  %v2374_v61 = vand.u32 2147483647, %v4919_v43  ;;  %v3444_v57 = vpop.f32.mrb[30].mxu1 }
 0x876   :  { %3870 = vpow2.f32 %v2392_v28  ;;  %v2383_v14 = vsub.f32 0.0, %v2375_v27  ;;  %v4923_v35 = vadd.f32 %v3444_v57, %v2231_v63  ;;  %v2353_v33 = vpop.f32.mrb[31].mxu1 }
 0x877   :  { %3872 = vpow2.f32 %v2390_v12  ;;  %v2382_v3 = vsub.f32 0.0, %v2374_v61  ;;  %v4926_v44 = vadd.f32 %v2353_v33, %v2226_v54 }
 0x878   :  { %v2396_v58 = vmul.f32 1.442695, %v2383_v14  ;;  %v2377_v41 = vand.u32 2147483647, %v4923_v35 }
 0x879   :  { %v2394_v42 = vmul.f32 1.442695, %v2382_v3  ;;  %v2376_v49 = vand.u32 2147483647, %v4926_v44 }
 0x87a   :  { %3874 = vpow2.f32 %v2396_v58  ;;  %v2385_v20 = vsub.f32 0.0, %v2377_v41 }
 0x87b   :  { %3876 = vpow2.f32 %v2394_v42  ;;  %v2384_v37 = vsub.f32 0.0, %v2376_v49 }
 0x87c   :  { %v3867_v45 = vpop.eup %3866  ;;  %v2400_v39 = vmul.f32 1.442695, %v2385_v20 }
 0x87d   :  { %v3869_v9 = vpop.eup %3868  ;;  %v2411_v53 = vadd.f32 1.0, %v3867_v45  ;;  %v2414_v5 = vmul.f32 -0.5, %v3867_v45  ;;  %v2417_v51 = vand.u32 2147483647, %v3867_v45  ;;  %v2398_v52 = vmul.f32 1.442695, %v2384_v37 }
 0x87e   :  { %v2402_v40 = vadd.f32 1.0, %v3869_v9  ;;  %3878 = vpow2.f32 %v2400_v39  ;;  %v2405_v46 = vmul.f32 -0.5, %v3869_v9  ;;  %v2408_v38 = vand.u32 2147483647, %v3869_v9 }
 0x87f   :  { %3880 = vlog2.f32 %v2411_v53  ;;  %v2415_v23 = vadd.f32 1.0, %v2414_v5  ;;  %vm4940_vm13 = vcmp.lt.f32.partialorder %v2417_v51, 0.0004427343 }
 0x880   :  { %v3871_v8 = vpop.eup %3870  ;;  %3882 = vlog2.f32 %v2402_v40  ;;  %v2406_v21 = vadd.f32 1.0, %v2405_v46  ;;  %vm2409_vm14 = vcmp.lt.f32.partialorder %v2408_v38, 0.0004427343 }
 0x881   :  { %v3873_v55 = vpop.eup %3872  ;;  %v2429_v56 = vadd.f32 1.0, %v3871_v8  ;;  %v2432_v11 = vmul.f32 -0.5, %v3871_v8  ;;  %v2416_v10 = vmul.f32 %v3867_v45, %v2415_v23  ;;  %v2435_v26 = vand.u32 2147483647, %v3871_v8 }
 0x882   :  { %v2420_v25 = vadd.f32 1.0, %v3873_v55  ;;  %v2423_v6 = vmul.f32 -0.5, %v3873_v55  ;;  %v2407_v60 = vmul.f32 %v3869_v9, %v2406_v21  ;;  %v2426_v22 = vand.u32 2147483647, %v3873_v55 }
 0x883   :  { %3884 = vlog2.f32 %v2429_v56  ;;  %v2433_v19 = vadd.f32 1.0, %v2432_v11  ;;  %vm2436_vm15 = vcmp.lt.f32.partialorder %v2435_v26, 0.0004427343  ;;  %v2368_v26 = vmin.f32 %v4926_v44, 0.0  ;;  %v3066_v44 = vld [vmem:[%s5068_s3 + $0x1e0] sm:$0xff] }
 0x884   :  { %v4929_v62 = vpop.eup %3874  ;;  %3886 = vlog2.f32 %v2420_v25  ;;  %v2424_v32 = vadd.f32 1.0, %v2423_v6  ;;  %vm2427_vm0 = vcmp.lt.f32.partialorder %v2426_v22, 0.0004427343  ;;  %v2366_v25 = vmin.f32 %v4919_v43, 0.0 }
 0x885   :  { %v4931_v18 = vpop.eup %3876  ;;  %v2447_v29 = vadd.f32 1.0, %v4929_v62  ;;  %v2450_v24 = vmul.f32 -0.5, %v4929_v62  ;;  %v2434_v63 = vmul.f32 %v3871_v8, %v2433_v19  ;;  %v2453_v33 = vand.u32 2147483647, %v4929_v62 }
 0x886   :  { %v2438_v4 = vadd.f32 1.0, %v4931_v18  ;;  %v2441_v47 = vmul.f32 -0.5, %v4931_v18  ;;  %v2425_v58 = vmul.f32 %v3873_v55, %v2424_v32  ;;  %v2444_v0 = vand.u32 2147483647, %v4931_v18  ;;  %v3068_v32 = vld [vmem:[%s5068_s3 + $0x1f0] sm:$0xff] }
 0x887   :  { %3888 = vlog2.f32 %v2447_v29  ;;  %v2451_v14 = vadd.f32 1.0, %v2450_v24  ;;  %v2367_v8 = vmin.f32 %v4917_v30, 0.0  ;;  %vm2454_vm2 = vcmp.lt.f32.partialorder %v2453_v33, 0.0004427343  ;;  %v3064_v24 = vld [vmem:[%s5068_s3 + $0x1d0] sm:$0xff] }
 0x888   :  { %v4936_v1 = vpop.eup %3878  ;;  %3890 = vlog2.f32 %v2438_v4  ;;  %v2442_v41 = vadd.f32 1.0, %v2441_v47  ;;  %vm2445_vm3 = vcmp.lt.f32.partialorder %v2444_v0, 0.0004427343  ;;  %v3069_v47 = vld [vmem:[%s5068_s3 + $0x1f8] sm:$0xff] }
 0x889   :  { %v3881_v2 = vpop.eup %3880  ;;  %3892 = vpow2.f32 %v2398_v52  ;;  %v2465_v31 = vadd.f32 1.0, %v4936_v1  ;;  %v2452_v49 = vmul.f32 %v4929_v62, %v2451_v14  ;;  %v2468_v62 = vmul.f32 -0.5, %v4936_v1 }
 0x88a   :  { %v3883_v48 = vpop.eup %3882  ;;  %v2413_v7 = vmul.f32 0.6931472, %v3881_v2  ;;  %v2443_v5 = vmul.f32 %v4931_v18, %v2442_v41  ;;  %v2471_v52 = vand.u32 2147483647, %v4936_v1  ;;  %v2369_v2 = vmin.f32 %v4923_v35, 0.0  ;;  %v3065_v35 = vld [vmem:[%s5068_s3 + $0x1d8] sm:$0xff] }
 0x88b   :  { %v2404_v13 = vmul.f32 0.6931472, %v3883_v48  ;;  %3894 = vlog2.f32 %v2465_v31  ;;  %v2469_v4 = vadd.f32 1.0, %v2468_v62  ;;  %v2789_v31 = vld [vmem:[%s5070_s5] sm:$0xff] }
 0x88c   :  { %v2419_v17 = vsel %vm4940_vm13, %v2416_v10, %v2413_v7  ;;  %vm2472_vm4 = vcmp.lt.f32.partialorder %v2471_v52, 0.0004427343  ;;  %3489 = vmatprep.mubr.msk.f32.mxu1 %vm390_vm1, %v2789_v31 }
 0x88d   :  { %v3885_v34 = vpop.eup %3884  ;;  %v2475_v28 = vsub.f32 %v2363_v59, %v2419_v17  ;;  %v2410_v27 = vsel %vm2409_vm14, %v2407_v60, %v2404_v13  ;;  %v2470_v59 = vmul.f32 %v4936_v1, %v2469_v4  ;;  %v3063_v1 = vld [vmem:[%s5068_s3 + $0x1c8] sm:$0xff]  ;;  %v2508_v17 = vpop.permute.xlu1 %2507 }
 0x88e   :  { %v3887_v12 = vpop.eup %3886  ;;  %v2474_v61 = vsub.f32 %v2362_v50, %v2410_v27  ;;  %v2431_v57 = vmul.f32 0.6931472, %v3885_v34  ;;  %v3067_v13 = vld [vmem:[%s5068_s3 + $0x1e8] sm:$0xff] }
 0x88f   :  { %v2422_v3 = vmul.f32 0.6931472, %v3887_v12 }
 0x890   :  { %v2437_v54 = vsel %vm2436_vm15, %v2434_v63, %v2431_v57  ;;  %v3604_v42 = vpack.c.bf16 %v2475_v28, %v2474_v61 }
 0x891   :  { %v3889_v20 = vpop.eup %3888  ;;  %v2477_v45 = vsub.f32 %v2365_v16, %v2437_v54  ;;  %v2428_v39 = vsel %vm2427_vm0, %v2425_v58, %v2422_v3  ;;  %v2518_v22 = vpop.permute.xlu1 %2517 }
 0x892   :  { %v3891_v9 = vpop.eup %3890  ;;  %v2476_v53 = vsub.f32 %v2364_v15, %v2428_v39  ;;  %v2449_v40 = vmul.f32 0.6931472, %v3889_v20  ;;  %3605 = vmatprep.subr.bf16.mxu0 %v3604_v42  ;;  %v2503_v15 = vpop.permute.xlu0 %2502 }
 0x893   :  { %v2440_v55 = vmul.f32 0.6931472, %v3891_v9  ;;  %3607 = vmatpush3.bf16.msra.mxu0 %v3604_v42  ;;  %v3893_v56 = vpop.eup %3892 }
 0x894   :  { %v2455_v46 = vsel %vm2454_vm2, %v2452_v49, %v2449_v40  ;;  %v3608_v37 = vpack.c.bf16 %v2477_v45, %v2476_v53  ;;  %v2456_v11 = vadd.f32 1.0, %v3893_v56  ;;  %v2459_v18 = vmul.f32 -0.5, %v3893_v56 }
 0x895   :  { %v2479_v23 = vsub.f32 %v2367_v8, %v2455_v46  ;;  %v2446_v51 = vsel %vm2445_vm3, %v2443_v5, %v2440_v55  ;;  %v3895_v21 = vpop.eup %3894  ;;  %v2462_v50 = vand.u32 2147483647, %v3893_v56  ;;  %v2528_v41 = vpop.permute.xlu1 %2527 }
 0x896   :  { %v2478_v29 = vsub.f32 %v2366_v25, %v2446_v51  ;;  %3609 = vmatprep.subr.bf16.mxu0 %v3608_v37  ;;  %3896 = vlog2.f32 %v2456_v11  ;;  %v2467_v43 = vmul.f32 0.6931472, %v3895_v21  ;;  %v2460_v6 = vadd.f32 1.0, %v2459_v18  ;;  %v2513_v12 = vpop.permute.xlu0 %2512 }
 0x897   :  { %3611 = vmatpush3.bf16.msra.mxu0 %v3608_v37  ;;  %vm2463_vm5 = vcmp.lt.f32.partialorder %v2462_v50, 0.0004427343 }
 0x898   :  { %v3612_v30 = vpack.c.bf16 %v2479_v23, %v2478_v29  ;;  %v2473_v38 = vsel %vm2472_vm4, %v2470_v59, %v2467_v43  ;;  %v2461_v36 = vmul.f32 %v3893_v56, %v2460_v6 }
 0x899   :  { %v2481_v19 = vsub.f32 %v2369_v2, %v2473_v38  ;;  %v2538_v25 = vpop.permute.xlu1 %2537 }
 0x89a   :  { %3613 = vmatprep.subr.bf16.mxu0 %v3612_v30  ;;  %v2523_v53 = vpop.permute.xlu0 %2522 }
 0x89b   :  { %3615 = vmatpush3.bf16.msra.mxu0 %v3612_v30 }
 0x89e   :  { %v2533_v18 = vpop.permute.xlu0 %2532 }
 0x8a0   :  { %v3897_v16 = vpop.eup %3896 }
 0x8a1   :  { %v2458_v10 = vmul.f32 0.6931472, %v3897_v16 }
 0x8a3   :  { %v2464_v48 = vsel %vm2463_vm5, %v2461_v36, %v2458_v10 }
 0x8a4   :  { %v2480_v7 = vsub.f32 %v2368_v26, %v2464_v48 }
 0x8a6   :  { %v3616_v60 = vpack.c.bf16 %v2481_v19, %v2480_v7 }
 0x8a8   :  { %3617 = vmatprep.subr.bf16.mxu0 %v3616_v60 }
 0x8a9   :  { %3619 = vmatpush3.bf16.msra.mxu0 %v3616_v60 }
 0x8ac   :  { %3462 = vmatmul.mubr.msk.f32.vlgmr.msra.gmra.mrb[32].mxu0 %vm390_vm1, %v3063_v1 }
 0x8ad   :  { %3464 = vmatprep.mubr.msk.f32.mxu0 %vm390_vm1, %v3064_v24 }
 0x8b0   :  { %3465 = vmatmul.mubr.msk.f32.gmra.mrb[34].mxu0 %vm390_vm1, %v3065_v35 }
 0x8b1   :  { %3467 = vmatprep.mubr.msk.f32.mxu0 %vm390_vm1, %v3066_v44 }
 0x8b4   :  { %3468 = vmatmul.mubr.msk.f32.gmra.mrb[36].mxu0 %vm390_vm1, %v3067_v13 }
 0x8b5   :  { %3470 = vmatprep.mubr.msk.f32.mxu0 %vm390_vm1, %v3068_v32 }
 0x8b8   :  { %3471 = vmatmul.mubr.msk.f32.gmra.mrb[38].mxu0 %vm390_vm1, %v3069_v47 }
 0x97f   :  { %v3463_v34 = vpop.f32.mrb[32].mxu0 }
 0x980   :  { %v4993_v28 = vadd.f32 %v3463_v34, %v2508_v17  ;;  %v2630_v27 = vpop.f32.mrb[33].mxu0 }
 0x981   :  { %v4995_v63 = vadd.f32 %v2630_v27, %v2503_v15 }
 0x982   :  { %v2678_v61 = vand.u32 2147483647, %v4993_v28 }
 0x983   :  { %v2677_v57 = vand.u32 2147483647, %v4995_v63  ;;  %v3466_v14 = vpop.f32.mrb[34].mxu0 }
 0x984   :  { %v2686_v33 = vsub.f32 0.0, %v2678_v61  ;;  %v4999_v3 = vadd.f32 %v3466_v14, %v2518_v22  ;;  %v2640_v58 = vpop.f32.mrb[35].mxu0  ;;  %v2670_v22 = vmin.f32 %v4993_v28, 0.0 }
 0x985   :  { %v2685_v54 = vsub.f32 0.0, %v2677_v57  ;;  %v5001_v0 = vadd.f32 %v2640_v58, %v2513_v12  ;;  %v2669_v12 = vmin.f32 %v4995_v63, 0.0 }
 0x986   :  { %v2695_v42 = vmul.f32 1.442695, %v2686_v33  ;;  %v2680_v20 = vand.u32 2147483647, %v4999_v3  ;;  %v2672_v57 = vmin.f32 %v4999_v3, 0.0 }
 0x987   :  { %v2693_v45 = vmul.f32 1.442695, %v2685_v54  ;;  %v2679_v39 = vand.u32 2147483647, %v5001_v0  ;;  %v3469_v9 = vpop.f32.mrb[36].mxu0 }
 0x988   :  { %3898 = vpow2.f32 %v2695_v42  ;;  %v2688_v40 = vsub.f32 0.0, %v2680_v20  ;;  %v5005_v49 = vadd.f32 %v3469_v9, %v2528_v41  ;;  %v2650_v8 = vpop.f32.mrb[37].mxu0 }
 0x989   :  { %3900 = vpow2.f32 %v2693_v45  ;;  %v2687_v55 = vsub.f32 0.0, %v2679_v39  ;;  %v5007_v5 = vadd.f32 %v2650_v8, %v2523_v53 }
 0x98a   :  { %v2699_v56 = vmul.f32 1.442695, %v2688_v40  ;;  %v2682_v46 = vand.u32 2147483647, %v5005_v49  ;;  %v2671_v40 = vmin.f32 %v5001_v0, 0.0 }
 0x98b   :  { %v2697_v37 = vmul.f32 1.442695, %v2687_v55  ;;  %v2681_v23 = vand.u32 2147483647, %v5007_v5  ;;  %v3472_v51 = vpop.f32.mrb[38].mxu0 }
 0x98c   :  { %3902 = vpow2.f32 %v2699_v56  ;;  %v2690_v11 = vsub.f32 0.0, %v2682_v46  ;;  %v5011_v29 = vadd.f32 %v3472_v51, %v2538_v25  ;;  %v2660_v62 = vpop.f32.mrb[39].mxu0 }
 0x98d   :  { %3904 = vpow2.f32 %v2697_v37  ;;  %v2689_v30 = vsub.f32 0.0, %v2681_v23  ;;  %v5014_v59 = vadd.f32 %v2660_v62, %v2533_v18 }
 0x98e   :  { %v2703_v21 = vmul.f32 1.442695, %v2690_v11  ;;  %v2684_v4 = vand.u32 2147483647, %v5011_v29 }
 0x98f   :  { %v2701_v52 = vmul.f32 1.442695, %v2689_v30  ;;  %v2683_v10 = vand.u32 2147483647, %v5014_v59 }
 0x990   :  { %3906 = vpow2.f32 %v2703_v21  ;;  %v2692_v43 = vsub.f32 0.0, %v2684_v4 }
 0x991   :  { %3908 = vpow2.f32 %v2701_v52  ;;  %v2691_v1 = vsub.f32 0.0, %v2683_v10 }
 0x992   :  { %v3899_v6 = vpop.eup %3898  ;;  %v2707_v50 = vmul.f32 1.442695, %v2692_v43 }
 0x993   :  { %v3901_v38 = vpop.eup %3900  ;;  %v2718_v16 = vadd.f32 1.0, %v3899_v6  ;;  %v2721_v26 = vmul.f32 -0.5, %v3899_v6  ;;  %v2724_v13 = vand.u32 2147483647, %v3899_v6  ;;  %v2705_v15 = vmul.f32 1.442695, %v2691_v1 }
 0x994   :  { %v2709_v2 = vadd.f32 1.0, %v3901_v38  ;;  %3910 = vpow2.f32 %v2707_v50  ;;  %v2712_v7 = vmul.f32 -0.5, %v3901_v38  ;;  %v2715_v61 = vand.u32 2147483647, %v3901_v38 }
 0x995   :  { %3912 = vlog2.f32 %v2718_v16  ;;  %v2722_v44 = vadd.f32 1.0, %v2721_v26  ;;  %vm5028_vm6 = vcmp.lt.f32.partialorder %v2724_v13, 0.0004427343 }
 0x996   :  { %v3903_v36 = vpop.eup %3902  ;;  %3914 = vlog2.f32 %v2709_v2  ;;  %v2713_v31 = vadd.f32 1.0, %v2712_v7  ;;  %vm2716_vm7 = vcmp.lt.f32.partialorder %v2715_v61, 0.0004427343 }
 0x997   :  { %v3905_v19 = vpop.eup %3904  ;;  %v2736_v48 = vadd.f32 1.0, %v3903_v36  ;;  %v2739_v32 = vmul.f32 -0.5, %v3903_v36  ;;  %v2723_v33 = vmul.f32 %v3899_v6, %v2722_v44  ;;  %v2742_v54 = vand.u32 2147483647, %v3903_v36 }
 0x998   :  { %v2727_v60 = vadd.f32 1.0, %v3905_v19  ;;  %v2730_v34 = vmul.f32 -0.5, %v3905_v19  ;;  %v2714_v20 = vmul.f32 %v3901_v38, %v2713_v31  ;;  %v2733_v8 = vand.u32 2147483647, %v3905_v19 }
 0x999   :  { %3916 = vlog2.f32 %v2736_v48  ;;  %v2740_v41 = vadd.f32 1.0, %v2739_v32  ;;  %vm2743_vm8 = vcmp.lt.f32.partialorder %v2742_v54, 0.0004427343  ;;  %v2675_v54 = vmin.f32 %v5014_v59, 0.0 }
 0x99a   :  { %v5017_v24 = vpop.eup %3906  ;;  %3918 = vlog2.f32 %v2727_v60  ;;  %v2731_v63 = vadd.f32 1.0, %v2730_v34  ;;  %vm2734_vm9 = vcmp.lt.f32.partialorder %v2733_v8, 0.0004427343  ;;  %v2673_v60 = vmin.f32 %v5007_v5, 0.0 }
 0x99b   :  { %v5019_v35 = vpop.eup %3908  ;;  %v2754_v47 = vadd.f32 1.0, %v5017_v24  ;;  %v2757_v45 = vmul.f32 -0.5, %v5017_v24  ;;  %v2741_v25 = vmul.f32 %v3903_v36, %v2740_v41  ;;  %v2760_v62 = vand.u32 2147483647, %v5017_v24 }
 0x99c   :  { %v2745_v17 = vadd.f32 1.0, %v5019_v35  ;;  %v2748_v9 = vmul.f32 -0.5, %v5019_v35  ;;  %v2732_v21 = vmul.f32 %v3905_v19, %v2731_v63  ;;  %v2751_v0 = vand.u32 2147483647, %v5019_v35 }
 0x99d   :  { %3920 = vlog2.f32 %v2754_v47  ;;  %v2758_v11 = vadd.f32 1.0, %v2757_v45  ;;  %v2674_v36 = vmin.f32 %v5005_v49, 0.0  ;;  %vm2761_vm10 = vcmp.lt.f32.partialorder %v2760_v62, 0.0004427343 }
 0x99e   :  { %v5024_v27 = vpop.eup %3910  ;;  %3922 = vlog2.f32 %v2745_v17  ;;  %v2749_v4 = vadd.f32 1.0, %v2748_v9  ;;  %vm2752_vm11 = vcmp.lt.f32.partialorder %v2751_v0, 0.0004427343 }
 0x99f   :  { %v3913_v14 = vpop.eup %3912  ;;  %3924 = vpow2.f32 %v2705_v15  ;;  %v2772_v3 = vadd.f32 1.0, %v5024_v27  ;;  %v2759_v10 = vmul.f32 %v5017_v24, %v2758_v11  ;;  %v2775_v24 = vmul.f32 -0.5, %v5024_v27 }
 0x9a0   :  { %v3915_v42 = vpop.eup %3914  ;;  %v2720_v28 = vmul.f32 0.6931472, %v3913_v14  ;;  %v2750_v26 = vmul.f32 %v5019_v35, %v2749_v4  ;;  %v2778_v15 = vand.u32 2147483647, %v5024_v27  ;;  %v2676_v14 = vmin.f32 %v5011_v29, 0.0  ;;  %v2801_v29 = vpop.permute.xlu1 %2800 }
 0x9a1   :  { %v2711_v39 = vmul.f32 0.6931472, %v3915_v42  ;;  %3926 = vlog2.f32 %v2772_v3  ;;  %v2776_v17 = vadd.f32 1.0, %v2775_v24 }
 0x9a2   :  { %v2726_v53 = vsel %vm5028_vm6, %v2723_v33, %v2720_v28  ;;  %vm2779_vm12 = vcmp.lt.f32.partialorder %v2778_v15, 0.0004427343 }
 0x9a3   :  { %v3917_v55 = vpop.eup %3916  ;;  %v2782_v56 = vsub.f32 %v2670_v22, %v2726_v53  ;;  %v2717_v46 = vsel %vm2716_vm7, %v2714_v20, %v2711_v39  ;;  %v2777_v22 = vmul.f32 %v5024_v27, %v2776_v17  ;;  %v2790_v27 = vld [vmem:[%s5070_s5 + $0x8] sm:$0xff]  ;;  %v2796_v39 = vpop.permute.xlu0 %2795 }
 0x9a4   :  { %v3919_v37 = vpop.eup %3918  ;;  %v2781_v23 = vsub.f32 %v2669_v12, %v2717_v46  ;;  %v2738_v51 = vmul.f32 0.6931472, %v3917_v55 }
 0x9a5   :  { %v2729_v30 = vmul.f32 0.6931472, %v3919_v37 }
 0x9a6   :  { %v2744_v18 = vsel %vm2743_vm8, %v2741_v25, %v2738_v51  ;;  %v3620_v52 = vpack.c.bf16 %v2782_v56, %v2781_v23 }
 0x9a7   :  { %v3921_v43 = vpop.eup %3920  ;;  %v2784_v6 = vsub.f32 %v2672_v57, %v2744_v18  ;;  %v2735_v50 = vsel %vm2734_vm9, %v2732_v21, %v2729_v30 }
 0x9a8   :  { %v3923_v38 = vpop.eup %3922  ;;  %v2783_v16 = vsub.f32 %v2671_v40, %v2735_v50  ;;  %v2756_v2 = vmul.f32 0.6931472, %v3921_v43  ;;  %3621 = vmatprep.subr.bf16.mxu1 %v3620_v52 }
 0x9a9   :  { %v2747_v19 = vmul.f32 0.6931472, %v3923_v38  ;;  %3623 = vmatpush3.bf16.msra.mxu1 %v3620_v52  ;;  %v3925_v48 = vpop.eup %3924 }
 0x9aa   :  { %v2762_v7 = vsel %vm2761_vm10, %v2759_v10, %v2756_v2  ;;  %v3624_v1 = vpack.c.bf16 %v2784_v6, %v2783_v16  ;;  %v2763_v32 = vadd.f32 1.0, %v3925_v48  ;;  %v2766_v35 = vmul.f32 -0.5, %v3925_v48 }
 0x9ab   :  { %v2786_v44 = vsub.f32 %v2674_v36, %v2762_v7  ;;  %v2753_v13 = vsel %vm2752_vm11, %v2750_v26, %v2747_v19  ;;  %v3927_v31 = vpop.eup %3926  ;;  %v2769_v12 = vand.u32 2147483647, %v3925_v48 }
 0x9ac   :  { %v2785_v47 = vsub.f32 %v2673_v60, %v2753_v13  ;;  %3625 = vmatprep.subr.bf16.mxu1 %v3624_v1  ;;  %3928 = vlog2.f32 %v2763_v32  ;;  %v2774_v5 = vmul.f32 0.6931472, %v3927_v31  ;;  %v2767_v34 = vadd.f32 1.0, %v2766_v35 }
 0x9ad   :  { %3627 = vmatpush3.bf16.msra.mxu1 %v3624_v1  ;;  %vm2770_vm13 = vcmp.lt.f32.partialorder %v2769_v12, 0.0004427343 }
 0x9ae   :  { %v3628_v49 = vpack.c.bf16 %v2786_v44, %v2785_v47  ;;  %v2780_v61 = vsel %vm2779_vm12, %v2777_v22, %v2774_v5  ;;  %v2768_v58 = vmul.f32 %v3925_v48, %v2767_v34 }
 0x9af   :  { %v2788_v41 = vsub.f32 %v2676_v14, %v2780_v61 }
 0x9b0   :  { %3629 = vmatprep.subr.bf16.mxu1 %v3628_v49 }
 0x9b1   :  { %3631 = vmatpush3.bf16.msra.mxu1 %v3628_v49 }
 0x9b6   :  { %v3929_v57 = vpop.eup %3928 }
 0x9b7   :  { %v2765_v33 = vmul.f32 0.6931472, %v3929_v57 }
 0x9b9   :  { %v2771_v42 = vsel %vm2770_vm13, %v2768_v58, %v2765_v33 }
 0x9ba   :  { %v2787_v28 = vsub.f32 %v2675_v54, %v2771_v42 }
 0x9bc   :  { %v3632_v20 = vpack.c.bf16 %v2788_v41, %v2787_v28 }
 0x9be   :  { %3633 = vmatprep.subr.bf16.mxu1 %v3632_v20 }
 0x9bf   :  { %3635 = vmatpush3.bf16.msra.mxu1 %v3632_v20 }
 0x9c2   :  { %3490 = vmatmul.mubr.msk.f32.vlgmr.msra.gmra.mrb[32].mxu1 %vm390_vm1, %v2790_v27 }
 0xa95   :  { %v3491_v45 = vpop.f32.mrb[32].mxu1 }
 0xa96   :  { %v2881_v63 = vadd.f32 %v3491_v45, %v2801_v29  ;;  %v2875_v9 = vpop.f32.mrb[33].mxu1 }
 0xa97   :  { %v2876_v59 = vadd.f32 %v2875_v9, %v2796_v39 }
 0xa98   :  { %2885 = vst [vmem:[#allocation2 + $0x8] sm:$0xff] %v2881_v63 }
 0xa99   :  { %2884 = vst [vmem:[#allocation2] sm:$0xff] %v2876_v59 }
 0xa9a   :  { %3941 = shalt.err (!%p3938_p4)
}
 0xa9b   :  { %s3942_s8 = scalar_lea.hbm %s5072_s7, 256 }
 0xa9c   :  { %p3943_p5 = scmp.ne.s32.totalorder %s5072_s7, %s3942_s8  ;;  %p3946_p6 = scmp.lt.u32.totalorder %s3942_s8, %s5072_s7 }
 0xa9e   :  { %p3948_p7 = pnand %p3946_p6, %p3943_p5 }
 0xaa0   :  { %3951 = shalt.err (!%p3948_p7)
}
 0xaa1   :  { %s3956_s12 = smov 128   ;;  %s3957_s13 = smov 8  }
 0xaa2   :  { %2897 = dma.vmem_to_hbm [thread:$0]  %s2892_s28, 256, %s5072_s7, [#allocation3], %s3956_s12, %s3956_s12, %s3957_s13  }
 0xaa3   :  { %3952 = dma.done.wait [#allocation3], 256  }
 0xaa4   :  { %3953 = vsyncadd [#allocation3], 4294967040 }
 0xaa5   :  { %2901 = vsyncpa [#allocation3], 1 }

</bundles_post_ra>
